<compile_context>
chip_gen: v7x
topology: tpu7x:2x2x1
jax: 0.10.0
libtpu: 0.0.40
codegen_flags: <defaults>
</compile_context>

<pallas_src>
import functools
import math

import jax
import jax.numpy as jnp
from jax.experimental import pallas as pl
from jax.experimental.pallas import tpu as pltpu


# ----------------------------------------------------------------------------
# Helpers
# ----------------------------------------------------------------------------
def _round_up(x, m):
    return ((x + m - 1) // m) * m


def _silu(y):
    # exp -> EUP ; reciprocal via pl.reciprocal (exact) instead of a VPU divide
    return y * pl.reciprocal(1.0 + jnp.exp(-y), approx=False)


_PARALLEL1 = pltpu.CompilerParams(dimension_semantics=("parallel",))


# ----------------------------------------------------------------------------
# Fused matmul kernel:  y = [res +] [silu]( [LN](x) @ W * scale + shift )
# ----------------------------------------------------------------------------
def _mm_kernel(x_ref, *refs, ln, has_scale, has_shift, has_res, act):
    i = 0
    x = x_ref[...]                                     # (tm, K) f32
    if ln:
        g = refs[i][...]
        b = refs[i + 1][...]
        i += 2
        mu = jnp.mean(x, axis=-1, keepdims=True)
        var = jnp.mean(jnp.square(x - mu), axis=-1, keepdims=True)
        x = (x - mu) * jax.lax.rsqrt(var + 1e-5) * g + b
    w = refs[i][...]                                   # (K, N) bf16
    i += 1
    y = jnp.dot(x.astype(jnp.bfloat16), w, preferred_element_type=jnp.float32)
    if has_scale:
        y = y * refs[i][...]
        i += 1
    if has_shift:
        y = y + refs[i][...]
        i += 1
    if act:
        y = _silu(y)
    if has_res:
        y = y + refs[i][...]
        i += 1
    o_ref = refs[i]
    o_ref[...] = y


def fused_matmul(x, w, *, scale=None, shift=None, ln=None, residual=None,
                 act=False, tm=512):
    """x:(M,K) f32, w:(K,N).  Optional LN(g,b) on x rows, BN affine, SiLU, residual."""
    M, K = x.shape
    N = w.shape[1]
    w = w.astype(jnp.bfloat16)

    tm_eff = min(tm, _round_up(M, 8))
    Mp = _round_up(M, tm_eff)
    pad = Mp - M
    if pad:
        x = jnp.pad(x, ((0, pad), (0, 0)))
        if residual is not None:
            residual = jnp.pad(residual, ((0, pad), (0, 0)))

    operands = [x]
    in_specs = [pl.BlockSpec((tm_eff, K), lambda i: (i, 0))]
    if ln is not None:
        g, b = ln
        operands += [g.reshape(1, K), b.reshape(1, K)]
        in_specs += [pl.BlockSpec((1, K), lambda i: (0, 0)),
                     pl.BlockSpec((1, K), lambda i: (0, 0))]
    operands.append(w)
    in_specs.append(pl.BlockSpec((K, N), lambda i: (0, 0)))
    if scale is not None:
        operands.append(scale.reshape(1, N))
        in_specs.append(pl.BlockSpec((1, N), lambda i: (0, 0)))
    if shift is not None:
        operands.append(shift.reshape(1, N))
        in_specs.append(pl.BlockSpec((1, N), lambda i: (0, 0)))
    if residual is not None:
        operands.append(residual)
        in_specs.append(pl.BlockSpec((tm_eff, N), lambda i: (i, 0)))

    kernel = functools.partial(
        _mm_kernel, ln=ln is not None, has_scale=scale is not None,
        has_shift=shift is not None, has_res=residual is not None, act=act)

    out = pl.pallas_call(
        kernel,
        out_shape=jax.ShapeDtypeStruct((Mp, N), jnp.float32),
        grid=(Mp // tm_eff,),
        in_specs=in_specs,
        out_specs=pl.BlockSpec((tm_eff, N), lambda i: (i, 0)),
        compiler_params=_PARALLEL1,
    )(*operands)
    return out[:M] if pad else out


# ----------------------------------------------------------------------------
# Depthwise 3x3 conv + BN + SiLU (halo kernel, no im2col in HBM)
# ----------------------------------------------------------------------------
def _dw3x3_kernel(x_ref, w_ref, s_ref, b_ref, o_ref):
    _, Ho, Wo, C = o_ref.shape
    w = w_ref[...]                                     # (9, C)
    acc = None
    k = 0
    for dh in range(3):
        for dw in range(3):
            patch = x_ref[0, dh:dh + Ho, dw:dw + Wo, :]        # (Ho, Wo, C)
            term = patch * w[k:k + 1, :]                       # bcast (1, C)
            acc = term if acc is None else acc + term
            k += 1
    y = acc * s_ref[...] + b_ref[...]
    o_ref[0] = _silu(y)


def dw_conv_bn_silu(x, w, bn, stride=1):
    B, H, W, C = x.shape
    xp = jnp.pad(x, ((0, 0), (1, 1), (1, 1), (0, 0)))
    wdw = jnp.transpose(w[:, 0, :, :], (1, 2, 0)).reshape(9, C)
    scale, shift = bn_fold(bn)
    y = pl.pallas_call(
        _dw3x3_kernel,
        out_shape=jax.ShapeDtypeStruct((B, H, W, C), jnp.float32),
        grid=(B,),
        in_specs=[
            pl.BlockSpec((1, H + 2, W + 2, C), lambda b: (b, 0, 0, 0)),
            pl.BlockSpec((9, C), lambda b: (0, 0)),
            pl.BlockSpec((1, C), lambda b: (0, 0)),
            pl.BlockSpec((1, C), lambda b: (0, 0)),
        ],
        out_specs=pl.BlockSpec((1, H, W, C), lambda b: (b, 0, 0, 0)),
        compiler_params=_PARALLEL1,
    )(xp, wdw, scale.reshape(1, C), shift.reshape(1, C))
    if stride == 2:
        # stride-2 conv == stride-1 conv subsampled at even positions (H, W even)
        y = y[:, ::2, ::2, :]
    return y


# ----------------------------------------------------------------------------
# Attention core (batched groups, MXU matmuls, online softmax not needed: N<=64)
# ----------------------------------------------------------------------------
def _attention_kernel(q_ref, k_ref, v_ref, o_ref, *, scale):
    q = q_ref[...]                                     # (Gb, N, Dh)
    k = k_ref[...]
    v = v_ref[...]
    dots = jnp.einsum('gnd,gmd->gnm', q, k,
                      preferred_element_type=jnp.float32) * scale
    m = jnp.max(dots, axis=-1, keepdims=True)
    p = jnp.exp(dots - m)
    attn = p * pl.reciprocal(jnp.sum(p, axis=-1, keepdims=True), approx=False)
    o_ref[...] = jnp.einsum('gnm,gmd->gnd', attn, v,
                            preferred_element_type=jnp.float32)


def attention_core(q, k, v, scale, gb=32):
    G, N, Dh = q.shape
    gb = min(gb, G)
    Gp = _round_up(G, gb)
    if Gp != G:
        padcfg = ((0, Gp - G), (0, 0), (0, 0))
        q, k, v = (jnp.pad(t, padcfg) for t in (q, k, v))
    out = pl.pallas_call(
        functools.partial(_attention_kernel, scale=scale),
        out_shape=jax.ShapeDtypeStruct((Gp, N, Dh), jnp.float32),
        grid=(Gp // gb,),
        in_specs=[pl.BlockSpec((gb, N, Dh), lambda i: (i, 0, 0))] * 3,
        out_specs=pl.BlockSpec((gb, N, Dh), lambda i: (i, 0, 0)),
        compiler_params=_PARALLEL1,
    )(q, k, v)
    return out[:G]


# ----------------------------------------------------------------------------
# Global average pool
# ----------------------------------------------------------------------------
def _gap_kernel(x_ref, o_ref):
    o_ref[...] = jnp.mean(x_ref[...], axis=1)


def global_avg_pool(x):  # (B, HW, C) -> (B, C)
    B, HW, C = x.shape
    return pl.pallas_call(
        _gap_kernel,
        out_shape=jax.ShapeDtypeStruct((B, C), jnp.float32),
        grid=(1,),
        in_specs=[pl.BlockSpec((B, HW, C), lambda i: (0, 0, 0))],
        out_specs=pl.BlockSpec((B, C), lambda i: (0, 0)),
        compiler_params=_PARALLEL1,
    )(x)


# ----------------------------------------------------------------------------
# Layer wrappers (glue: BN folding, im2col for dense 3x3 convs, reshapes)
# ----------------------------------------------------------------------------
def bn_fold(bn, eps=1e-5):
    scale = bn["gamma"] / jnp.sqrt(bn["var"] + eps)
    shift = bn["beta"] - bn["mean"] * scale
    return scale, shift


def _im2col(x, k, stride):
    # TODO(synk): dense 3x3 convs (few, small tensors here) still im2col in XLA;
    # only the memory-bound depthwise path got the halo kernel.
    B, H, W, C = x.shape
    xp = jnp.pad(x, ((0, 0), (1, 1), (1, 1), (0, 0)))
    Ho = (H + 2 - k) // stride + 1
    Wo = (W + 2 - k) // stride + 1
    patches = [xp[:, dh:dh + Ho * stride:stride, dw:dw + Wo * stride:stride, :]
               for dh in range(k) for dw in range(k)]
    return jnp.stack(patches, axis=3), Ho, Wo          # (B, Ho, Wo, k*k, C)


def conv_nxn_bn_silu(x, w, bn, stride=1):
    B, H, W, Cin = x.shape
    Cout, _, kh, kw = w.shape
    p, Ho, Wo = _im2col(x, kh, stride)
    p = p.reshape(B * Ho * Wo, kh * kw * Cin)
    wmat = jnp.transpose(w, (2, 3, 1, 0)).reshape(kh * kw * Cin, Cout)
    scale, shift = bn_fold(bn)
    y = fused_matmul(p, wmat, scale=scale, shift=shift, act=True)
    return y.reshape(B, Ho, Wo, Cout)


def conv_1x1_bn_act(x, w, bn, act=True, residual=None):
    B, H, W, Cin = x.shape
    Cout = w.shape[0]
    wmat = w[:, :, 0, 0].T
    scale, shift = bn_fold(bn)
    res2d = residual.reshape(-1, Cout) if residual is not None else None
    y = fused_matmul(x.reshape(-1, Cin), wmat, scale=scale, shift=shift,
                     act=act, residual=res2d)
    return y.reshape(B, H, W, Cout)


def mv2_block(x, p):
    h = conv_1x1_bn_act(x, p["pw1_w"], p["pw1_bn"], act=True)
    h = dw_conv_bn_silu(h, p["dw_w"], p["dw_bn"], stride=p["stride"])
    res = x if p["use_res"] else None
    h = conv_1x1_bn_act(h, p["pw2_w"], p["pw2_bn"], act=False, residual=res)
    return h


def transformer(x, layers, heads, dim_head):
    B, P_, N, D = x.shape
    inner = heads * dim_head
    xf = x.reshape(-1, D)
    for lyr in layers:
        # --- attention, PreNorm fused into the QKV matmul, residual fused in out-proj
        qkv = fused_matmul(xf, lyr["attn"]["to_qkv_w"].T,
                           ln=(lyr["ln1_g"], lyr["ln1_b"]), act=False)
        q, k, v = jnp.split(qkv, 3, axis=-1)

        def to_heads(t):  # 'b p n (h d) -> (b p h) n d'
            return (t.reshape(B, P_, N, heads, dim_head)
                     .transpose(0, 1, 3, 2, 4)
                     .reshape(B * P_ * heads, N, dim_head))

        o = attention_core(to_heads(q), to_heads(k), to_heads(v),
                           scale=dim_head ** (-0.5))
        o = (o.reshape(B, P_, heads, N, dim_head)
              .transpose(0, 1, 3, 2, 4)
              .reshape(B * P_ * N, inner))
        xf = fused_matmul(o, lyr["attn"]["to_out_w"].T,
                          shift=lyr["attn"]["to_out_b"], residual=xf, act=False)

        # --- feedforward, PreNorm fused into W1, residual fused into W2
        h = fused_matmul(xf, lyr["ff"]["w1"].T, ln=(lyr["ln2_g"], lyr["ln2_b"]),
                         shift=lyr["ff"]["b1"], act=True)
        xf = fused_matmul(h, lyr["ff"]["w2"].T, shift=lyr["ff"]["b2"],
                          residual=xf, act=False)
    return xf.reshape(B, P_, N, D)


def mobilevit_block(x, p, ph=2, pw=2, heads=4, dim_head=8):
    y = x
    x = conv_nxn_bn_silu(x, p["conv1_w"], p["conv1_bn"], stride=1)
    x = conv_1x1_bn_act(x, p["conv2_w"], p["conv2_bn"], act=True)
    B, H, W, D = x.shape
    h, w = H // ph, W // pw
    # 'b d (h ph) (w pw) -> b (ph pw) (h w) d'
    x = (x.reshape(B, h, ph, w, pw, D)
          .transpose(0, 2, 4, 1, 3, 5)
          .reshape(B, ph * pw, h * w, D))
    x = transformer(x, p["transformer"], heads, dim_head)
    # 'b (ph pw) (h w) d -> b d (h ph) (w pw)'
    x = (x.reshape(B, ph, pw, h, w, D)
          .transpose(0, 3, 1, 4, 2, 5)
          .reshape(B, H, W, D))
    x = conv_1x1_bn_act(x, p["conv3_w"], p["conv3_bn"], act=True)
    x = jnp.concatenate([x, y], axis=-1)
    x = conv_nxn_bn_silu(x, p["conv4_w"], p["conv4_bn"], stride=1)
    return x


def mobilevit_forward(x_nchw, P):
    x = jnp.transpose(x_nchw, (0, 2, 3, 1))            # NCHW -> NHWC
    x = conv_nxn_bn_silu(x, P["conv1_w"], P["conv1_bn"], stride=2)
    for blk in P["stem"]:
        x = mv2_block(x, blk)
    for stage in P["trunk"]:
        x = mv2_block(x, stage["mv2"])
        x = mobilevit_block(x, stage["mvit"])
    x = conv_1x1_bn_act(x, P["head_conv_w"], P["head_bn"], act=True)
    B, H, W, C = x.shape
    pooled = global_avg_pool(x.reshape(B, H * W, C))    # 'b c h w -> b c' mean
    logits = fused_matmul(pooled, P["fc_w"].T, act=False)
    return logits


# ----------------------------------------------------------------------------
# Deterministic parameter construction (PyTorch-shaped weights)
# ----------------------------------------------------------------------------
def make_key_gen(seed):
    state = {"key": jax.random.PRNGKey(seed)}

    def gen():
        state["key"], sub = jax.random.split(state["key"])
        return sub

    return gen


def make_conv(gen, cout, cin, k):
    return jax.random.normal(gen(), (cout, cin, k, k), jnp.float32) / math.sqrt(cin * k * k)


def make_dwconv(gen, c, k):
    return jax.random.normal(gen(), (c, 1, k, k), jnp.float32) / math.sqrt(k * k)


def make_bn(gen, c):
    return dict(
        gamma=1.0 + 0.1 * jax.random.normal(gen(), (c,), jnp.float32),
        beta=0.05 * jax.random.normal(gen(), (c,), jnp.float32),
        mean=0.05 * jax.random.normal(gen(), (c,), jnp.float32),
        var=0.5 + jax.random.uniform(gen(), (c,), jnp.float32),
    )


def make_linear(gen, out_d, in_d, bias=True):
    w = jax.random.normal(gen(), (out_d, in_d), jnp.float32) / math.sqrt(in_d)
    b = 0.05 * jax.random.normal(gen(), (out_d,), jnp.float32) if bias else None
    return w, b


def make_mv2(gen, inp, oup, stride, expansion=4):
    hidden = inp * expansion
    return dict(
        stride=stride, use_res=(stride == 1 and inp == oup),
        pw1_w=make_conv(gen, hidden, inp, 1), pw1_bn=make_bn(gen, hidden),
        dw_w=make_dwconv(gen, hidden, 3), dw_bn=make_bn(gen, hidden),
        pw2_w=make_conv(gen, oup, hidden, 1), pw2_bn=make_bn(gen, oup),
    )


def make_mvit_block(gen, dim, depth, channel, mlp_dim, heads=4, dim_head=8):
    inner = heads * dim_head
    layers = []
    for _ in range(depth):
        qkv_w, _ = make_linear(gen, inner * 3, dim, bias=False)
        out_w, out_b = make_linear(gen, dim, inner, bias=True)
        w1, b1 = make_linear(gen, mlp_dim, dim, bias=True)
        w2, b2 = make_linear(gen, dim, mlp_dim, bias=True)
        layers.append(dict(
            ln1_g=jnp.ones((dim,), jnp.float32), ln1_b=jnp.zeros((dim,), jnp.float32),
            attn=dict(to_qkv_w=qkv_w, to_out_w=out_w, to_out_b=out_b),
            ln2_g=jnp.ones((dim,), jnp.float32), ln2_b=jnp.zeros((dim,), jnp.float32),
            ff=dict(w1=w1, b1=b1, w2=w2, b2=b2),
        ))
    return dict(
        conv1_w=make_conv(gen, channel, channel, 3), conv1_bn=make_bn(gen, channel),
        conv2_w=make_conv(gen, dim, channel, 1), conv2_bn=make_bn(gen, dim),
        transformer=layers,
        conv3_w=make_conv(gen, channel, dim, 1), conv3_bn=make_bn(gen, channel),
        conv4_w=make_conv(gen, channel, 2 * channel, 3), conv4_bn=make_bn(gen, channel),
    )


def init_mobilevit_params(gen, dims, channels, num_classes,
                          expansion=4, depths=(1, 1, 1)):
    P = dict(conv1_w=make_conv(gen, channels[0], 3, 3), conv1_bn=make_bn(gen, channels[0]))
    stem_cfg = [(channels[0], channels[1], 1), (channels[1], channels[2], 2),
                (channels[2], channels[3], 1), (channels[2], channels[3], 1)]
    P["stem"] = [make_mv2(gen, i, o, s, expansion) for (i, o, s) in stem_cfg]
    trunk_cfg = [
        (channels[3], channels[4], channels[5], dims[0], depths[0], int(dims[0] * 2)),
        (channels[5], channels[6], channels[7], dims[1], depths[1], int(dims[1] * 4)),
        (channels[7], channels[8], channels[9], dims[2], depths[2], int(dims[2] * 4)),
    ]
    P["trunk"] = []
    for (inp, oup, ch, dim, depth, mlp) in trunk_cfg:
        P["trunk"].append(dict(
            mv2=make_mv2(gen, inp, oup, 2, expansion),
            mvit=make_mvit_block(gen, dim, depth, ch, mlp),
        ))
    last_dim = channels[-1]
    P["head_conv_w"] = make_conv(gen, last_dim, channels[-2], 1)
    P["head_bn"] = make_bn(gen, last_dim)
    P["fc_w"], _ = make_linear(gen, num_classes, last_dim, bias=False)
    return P


# ----------------------------------------------------------------------------
if __name__ == "__main__":
    # Small MobileViT config (image must be divisible by 64 so every
    # MobileViTBlock sees a spatial size divisible by the 2x2 patch).
    dims = (16, 24, 32)
    channels = (8, 8, 16, 16, 16, 16, 24, 24, 32, 32, 64)
    num_classes = 10
    depths = (1, 1, 1)

    gen = make_key_gen(42)
    params = init_mobilevit_params(gen, dims, channels, num_classes, depths=depths)

    x = jax.random.normal(jax.random.PRNGKey(0), (2, 3, 64, 64), jnp.float32)  # NCHW

    logits = mobilevit_forward(x, params)
    logits = jax.block_until_ready(logits)

    assert logits.shape == (2, num_classes), logits.shape
    assert bool(jnp.all(jnp.isfinite(logits)))
    print("KERNEL_OK")
</pallas_src>

<mosaic_0001>
module attributes {stable_mosaic.version = 11 : i64} {
  func.func @_mm_kernel(%arg0: i32, %arg1: memref<512x27xf32, #tpu.memory_space<vmem>>, %arg2: memref<27x8xbf16, #tpu.memory_space<vmem>>, %arg3: memref<1x8xf32, #tpu.memory_space<vmem>>, %arg4: memref<1x8xf32, #tpu.memory_space<vmem>>, %arg5: memref<512x8xf32, #tpu.memory_space<vmem>>) attributes {dimension_semantics = [#tpu.dimension_semantics<parallel>], iteration_bounds = array<i64: 4>, scalar_prefetch = 0 : i64, scratch_operands = 0 : i64, tpu.core_type = #tpu.core_type<tc>, window_params = [{transform_indices = @transform_0, window_bounds = array<i64: 512, 27>}, {pipeline_mode = #tpu.pipeline_mode<synchronous>, transform_indices = @transform_1, window_bounds = array<i64: 27, 8>}, {pipeline_mode = #tpu.pipeline_mode<synchronous>, transform_indices = @transform_2, window_bounds = array<i64: 1, 8>}, {pipeline_mode = #tpu.pipeline_mode<synchronous>, transform_indices = @transform_3, window_bounds = array<i64: 1, 8>}, {transform_indices = @transform_4, window_bounds = array<i64: 512, 8>}]} {
    %c0 = arith.constant 0 : index
    %c0_0 = arith.constant 0 : index
    %0 = vector.load %arg1[%c0, %c0_0] : memref<512x27xf32, #tpu.memory_space<vmem>>, vector<512x27xf32>
    %c0_1 = arith.constant 0 : index
    %c0_2 = arith.constant 0 : index
    %1 = vector.load %arg2[%c0_1, %c0_2] : memref<27x8xbf16, #tpu.memory_space<vmem>>, vector<27x8xbf16>
    %2 = arith.truncf %0 : vector<512x27xf32> to vector<512x27xbf16>
    %cst = arith.constant dense<0.000000e+00> : vector<512x8xf32>
    %3 = tpu.matmul %2, %1, %cst {dimension_numbers = #tpu.dot_dimension_numbers<[1], [0], [0], [1], [0, 0, 1, 1], [], []>} : vector<512x27xbf16>, vector<27x8xbf16>, vector<512x8xf32> -> vector<512x8xf32>
    %c0_3 = arith.constant 0 : index
    %c0_4 = arith.constant 0 : index
    %4 = vector.load %arg3[%c0_3, %c0_4] : memref<1x8xf32, #tpu.memory_space<vmem>>, vector<1x8xf32>
    %5 = vector.broadcast %4 : vector<1x8xf32> to vector<512x8xf32>
    %6 = arith.mulf %3, %5 : vector<512x8xf32>
    %c0_5 = arith.constant 0 : index
    %c0_6 = arith.constant 0 : index
    %7 = vector.load %arg4[%c0_5, %c0_6] : memref<1x8xf32, #tpu.memory_space<vmem>>, vector<1x8xf32>
    %8 = vector.broadcast %7 : vector<1x8xf32> to vector<512x8xf32>
    %9 = arith.addf %6, %8 : vector<512x8xf32>
    %cst_7 = arith.constant 0.000000e+00 : f32
    %10 = vector.broadcast %cst_7 : f32 to vector<512x8xf32>
    %11 = arith.subf %10, %9 : vector<512x8xf32>
    %12 = math.exp %11 : vector<512x8xf32>
    %cst_8 = arith.constant 1.000000e+00 : f32
    %13 = vector.broadcast %cst_8 : f32 to vector<512x8xf32>
    %14 = arith.addf %13, %12 : vector<512x8xf32>
    %15 = tpu.reciprocal %14 : vector<512x8xf32> -> vector<512x8xf32>
    %16 = arith.mulf %9, %15 : vector<512x8xf32>
    %c0_9 = arith.constant 0 : index
    %c0_10 = arith.constant 0 : index
    %17 = vector.load %arg5[%c0_9, %c0_10] : memref<512x8xf32, #tpu.memory_space<vmem>>, vector<512x8xf32>
    tpu.vector_store %arg5[%c0_9, %c0_10], %16 {strides = array<i32>} : memref<512x8xf32, #tpu.memory_space<vmem>>, vector<512x8xf32>,
    return
  }
  func.func @transform_0(%arg0: i32) -> (i32, i32) {
    %c0_i32 = arith.constant 0 : i32
    %c0_i32_0 = arith.constant 0 : i32
    return %arg0, %c0_i32 : i32, i32
  }
  func.func @transform_1(%arg0: i32) -> (i32, i32) {
    %c0_i32 = arith.constant 0 : i32
    %c0_i32_0 = arith.constant 0 : i32
    %c0_i32_1 = arith.constant 0 : i32
    return %c0_i32, %c0_i32_0 : i32, i32
  }
  func.func @transform_2(%arg0: i32) -> (i32, i32) {
    %c0_i32 = arith.constant 0 : i32
    %c0_i32_0 = arith.constant 0 : i32
    %c0_i32_1 = arith.constant 0 : i32
    return %c0_i32, %c0_i32_0 : i32, i32
  }
  func.func @transform_3(%arg0: i32) -> (i32, i32) {
    %c0_i32 = arith.constant 0 : i32
    %c0_i32_0 = arith.constant 0 : i32
    %c0_i32_1 = arith.constant 0 : i32
    return %c0_i32, %c0_i32_0 : i32, i32
  }
  func.func @transform_4(%arg0: i32) -> (i32, i32) {
    %c0_i32 = arith.constant 0 : i32
    %c0_i32_0 = arith.constant 0 : i32
    return %arg0, %c0_i32 : i32, i32
  }
}

</mosaic_0001>

<bundles_post_ra>
// kernel: tpu_custom_call.1
= control target key start
LH: loop header
LB: loop body
LE: loop exit
PB: predicated region body
PF: predicated region fallthrough
CT: control target
= control target key end

     0   :  { %s1809_s15 = smov 0   ;;  %s2627_s0 = inlined_call_operand.vmem [shape: f32[2048,27], index: 0, kind: input, shape index: {}]   ;;  %s2628_s1 = inlined_call_operand.vmem [shape: bf16[27,8], index: 1, kind: input, shape index: {}]   ;;  %s2629_s2 = inlined_call_operand.vmem [shape: f32[1,8], index: 2, kind: input, shape index: {}]   ;;  %s2630_s3 = inlined_call_operand.vmem [shape: f32[1,8], index: 3, kind: input, shape index: {}]   ;;  %s2631_s4 = inlined_call_operand.vmem [shape: f32[2048,8], index: 4, kind: output, shape index: {}]  }
   0x1 LB: > { %s1353_s16 = sadd.s32 4294967295, %s1781_s15   ;;  %p1357_p0 = scmp.ge.s32.totalorder %s1781_s15, 1  ;;  %s1781_s15 = sphi %s1809_s15, %s14_s15  }
   0x2   : > { %p163_p1 = scmp.lt.s32.totalorder %s1781_s15, 5 }
   0x4   : > { %p164_p2 = pnand %p1357_p0, %p163_p1 }
   0x6   : > { %167 = sbr.rel (%p164_p2) target bundleno = 388 (0x184), region = 36 }
   0xd   : > { %v1515_v0 = vld [vmem:[%s2628_s1] sm:$0xff]   ;;  %vm410_vm0 = vcmask 1044480   ;;  %v1516_v1 = vld [vmem:[%s2628_s1 + $0x8] sm:$0x3f]   ;;  %vm411_vm1 = vcmask 1045504   ;;  %s1358_s21 = sshll.u32 %s1353_s16, 6 }
   0xe   : > { %1434 = vmatprep.subr.bf16.mxu0 %v1515_v0  ;;  %1502 = vmatprep.subr.bf16.mxu1 %v1515_v0  ;;  %v1783_v2 = vmov 65535   ;;  %p190_p3 = scmp.lt.s32.totalorder %s1358_s21, 255  ;;  %vm313_vm2 = vcmask 220160   ;;  %vm1232_vm3 = vcmask 64512  }
   0xf   : > { %1435 = vmatpush3.bf16.msra.mxu0 %v1515_v0  ;;  %1504 = vmatpush3.bf16.msra.mxu1 %v1515_v0  ;;  %v412_v3 = vsel %vm410_vm0, 4294967295, %v1783_v2 }
  0x10   : > { %v413_v4 = vsel %vm411_vm1, %v412_v3, 0  ;;  %s2647_s21 = smov (!%p190_p3, %s1358_s21), 255 }
  0x11   : > { %v415_v5 = vand.u32 %v1516_v1, %v413_v4  ;;  %s1359_s22 = sshll.u32 %s2647_s21, 3 }
  0x12   : > { %s1831_s25 = scalar_lea.vmem %s2627_s0, %s1359_s22  ;;  %s2083_s6 = scalar_lea.vmem %s2631_s4, %s1359_s22 }
  0x13   : > { %1436 = vmatprep.subr.bf16.mxu0 %v415_v5  ;;  %1503 = vmatprep.subr.bf16.mxu1 %v415_v5  ;;  %v202_v6 = vld [vmem:[%s1831_s25] sm:$0xff]  ;;  %v203_v7 = vld [vmem:[%s1831_s25 + $0x8] sm:$0xff]  ;;  %v204_v11 = vld [vmem:[%s1831_s25 + $0x10] sm:$0xff] }
  0x14   : > { %1437 = vmatpush3.bf16.msra.mxu0 %v415_v5  ;;  %1505 = vmatpush3.bf16.msra.mxu1 %v415_v5  ;;  %v234_v8 = vld [vmem:[%s1831_s25 + $0x100] sm:$0xff]  ;;  %v270_v9 = vpack.c.bf16 %v203_v7, %v202_v6  ;;  %v235_v10 = vld [vmem:[%s1831_s25 + $0x108] sm:$0xff]  ;;  %v205_v12 = vld [vmem:[%s1831_s25 + $0x18] sm:$0xff] }
  0x15   : > { %v286_v13 = vpack.c.bf16 %v235_v10, %v234_v8  ;;  %v271_v14 = vpack.c.bf16 %v205_v12, %v204_v11  ;;  %v236_v15 = vld [vmem:[%s1831_s25 + $0x110] sm:$0xff]  ;;  %v237_v16 = vld [vmem:[%s1831_s25 + $0x118] sm:$0xff]  ;;  %v206_v17 = vld [vmem:[%s1831_s25 + $0x20] sm:$0xff] }
  0x16   : > { %1438 = vmatprep.mubr.msk.bf16.mxu0 %vm313_vm2, %v270_v9  ;;  %v287_v18 = vpack.c.bf16 %v237_v16, %v236_v15  ;;  %v207_v19 = vld [vmem:[%s1831_s25 + $0x28] sm:$0xff]  ;;  %v238_v20 = vld [vmem:[%s1831_s25 + $0x120] sm:$0xff]  ;;  %v208_v24 = vld [vmem:[%s1831_s25 + $0x30] sm:$0xff] }
  0x17   : > { %v239_v21 = vld [vmem:[%s1831_s25 + $0x128] sm:$0xff]  ;;  %1470 = vmatprep.mubr.msk.bf16.mxu1 %vm313_vm2, %v286_v13  ;;  %1439 = vmatmul.mubr.msk.bf16.vlgmr.msra.gmra.mrb[0].mxu0 %vm313_vm2, %v271_v14  ;;  %v272_v22 = vpack.c.bf16 %v207_v19, %v206_v17  ;;  %v209_v25 = vld [vmem:[%s1831_s25 + $0x38] sm:$0xff]  ;;  %v240_v26 = vld [vmem:[%s1831_s25 + $0x130] sm:$0xff] }
  0x18   : > { %v288_v23 = vpack.c.bf16 %v239_v21, %v238_v20  ;;  %1471 = vmatmul.mubr.msk.bf16.vlgmr.msra.gmra.mrb[0].mxu1 %vm313_vm2, %v287_v18  ;;  %v241_v27 = vld [vmem:[%s1831_s25 + $0x138] sm:$0xff]  ;;  %v210_v28 = vld [vmem:[%s1831_s25 + $0x40] sm:$0xff]  ;;  %v211_v29 = vld [vmem:[%s1831_s25 + $0x48] sm:$0xff]  ;;  %v273_v32 = vpack.c.bf16 %v209_v25, %v208_v24 }
  0x19   : > { %1442 = vmatprep.mubr.msk.bf16.mxu0 %vm313_vm2, %v272_v22  ;;  %v242_v30 = vld [vmem:[%s1831_s25 + $0x140] sm:$0xff]  ;;  %v243_v31 = vld [vmem:[%s1831_s25 + $0x148] sm:$0xff]  ;;  %v289_v33 = vpack.c.bf16 %v241_v27, %v240_v26  ;;  %v274_v34 = vpack.c.bf16 %v211_v29, %v210_v28  ;;  %v212_v36 = vld [vmem:[%s1831_s25 + $0x50] sm:$0xff] }
  0x1a   : > { %1474 = vmatprep.mubr.msk.bf16.mxu1 %vm313_vm2, %v288_v23  ;;  %v290_v35 = vpack.c.bf16 %v243_v31, %v242_v30  ;;  %v213_v37 = vld [vmem:[%s1831_s25 + $0x58] sm:$0xff]  ;;  %v244_v38 = vld [vmem:[%s1831_s25 + $0x150] sm:$0xff]  ;;  %v214_v40 = vld [vmem:[%s1831_s25 + $0x60] sm:$0xff] }
  0x1b   : > { %v245_v39 = vld [vmem:[%s1831_s25 + $0x158] sm:$0xff]  ;;  %v215_v41 = vld [vmem:[%s1831_s25 + $0x68] sm:$0xff]  ;;  %v246_v42 = vld [vmem:[%s1831_s25 + $0x160] sm:$0xff]  ;;  %v275_v44 = vpack.c.bf16 %v213_v37, %v212_v36 }
  0x1c   : > { %v247_v43 = vld [vmem:[%s1831_s25 + $0x168] sm:$0xff]  ;;  %v291_v45 = vpack.c.bf16 %v245_v39, %v244_v38  ;;  %v276_v46 = vpack.c.bf16 %v215_v41, %v214_v40  ;;  %v216_v48 = vld [vmem:[%s1831_s25 + $0x70] sm:$0xff]  ;;  %v217_v49 = vld [vmem:[%s1831_s25 + $0x78] sm:$0xff] }
  0x1d   : > { %v292_v47 = vpack.c.bf16 %v247_v43, %v246_v42  ;;  %v248_v50 = vld [vmem:[%s1831_s25 + $0x170] sm:$0xff]  ;;  %v249_v51 = vld [vmem:[%s1831_s25 + $0x178] sm:$0xff]  ;;  %v218_v52 = vld [vmem:[%s1831_s25 + $0x80] sm:$0xff]  ;;  %v277_v56 = vpack.c.bf16 %v217_v49, %v216_v48 }
  0x1e   : > { %v219_v53 = vld [vmem:[%s1831_s25 + $0x88] sm:$0xff]  ;;  %v250_v54 = vld [vmem:[%s1831_s25 + $0x180] sm:$0xff]  ;;  %v293_v57 = vpack.c.bf16 %v249_v51, %v248_v50  ;;  %v220_v60 = vld [vmem:[%s1831_s25 + $0x90] sm:$0xff] }
  0x1f   : > { %1443 = vmatmul.mubr.msk.bf16.gmra.mrb[4].mxu0 %vm313_vm2, %v273_v32  ;;  %v251_v55 = vld [vmem:[%s1831_s25 + $0x188] sm:$0xff]  ;;  %v278_v58 = vpack.c.bf16 %v219_v53, %v218_v52  ;;  %v221_v61 = vld [vmem:[%s1831_s25 + $0x98] sm:$0xff]  ;;  %v252_v62 = vld [vmem:[%s1831_s25 + $0x190] sm:$0xff] }
  0x20   : > { %1475 = vmatmul.mubr.msk.bf16.gmra.mrb[4].mxu1 %vm313_vm2, %v289_v33  ;;  %1446 = vmatprep.mubr.msk.bf16.mxu0 %vm313_vm2, %v274_v34  ;;  %v294_v59 = vpack.c.bf16 %v251_v55, %v250_v54  ;;  %v253_v63 = vld [vmem:[%s1831_s25 + $0x198] sm:$0xff]  ;;  %v222_v0 = vld [vmem:[%s1831_s25 + $0xa0] sm:$0xff]  ;;  %v223_v1 = vld [vmem:[%s1831_s25 + $0xa8] sm:$0xff]  ;;  %v279_v4 = vpack.c.bf16 %v221_v61, %v220_v60 }
  0x21   : > { %1478 = vmatprep.mubr.msk.bf16.mxu1 %vm313_vm2, %v290_v35  ;;  %v254_v2 = vld [vmem:[%s1831_s25 + $0x1a0] sm:$0xff]  ;;  %v255_v3 = vld [vmem:[%s1831_s25 + $0x1a8] sm:$0xff]  ;;  %v295_v5 = vpack.c.bf16 %v253_v63, %v252_v62  ;;  %v280_v6 = vpack.c.bf16 %v223_v1, %v222_v0  ;;  %v224_v8 = vld [vmem:[%s1831_s25 + $0xb0] sm:$0xff] }
  0x22   : > { %v296_v7 = vpack.c.bf16 %v255_v3, %v254_v2  ;;  %v225_v9 = vld [vmem:[%s1831_s25 + $0xb8] sm:$0xff]  ;;  %v256_v10 = vld [vmem:[%s1831_s25 + $0x1b0] sm:$0xff]  ;;  %v226_v12 = vld [vmem:[%s1831_s25 + $0xc0] sm:$0xff] }
  0x23   : > { %v257_v11 = vld [vmem:[%s1831_s25 + $0x1b8] sm:$0xff]  ;;  %v227_v13 = vld [vmem:[%s1831_s25 + $0xc8] sm:$0xff]  ;;  %v258_v14 = vld [vmem:[%s1831_s25 + $0x1c0] sm:$0xff]  ;;  %v281_v16 = vpack.c.bf16 %v225_v9, %v224_v8 }
  0x24   : > { %v259_v15 = vld [vmem:[%s1831_s25 + $0x1c8] sm:$0xff]  ;;  %v297_v17 = vpack.c.bf16 %v257_v11, %v256_v10  ;;  %v282_v18 = vpack.c.bf16 %v227_v13, %v226_v12  ;;  %v228_v20 = vld [vmem:[%s1831_s25 + $0xd0] sm:$0xff]  ;;  %v229_v21 = vld [vmem:[%s1831_s25 + $0xd8] sm:$0xff] }
  0x25   : > { %v298_v19 = vpack.c.bf16 %v259_v15, %v258_v14  ;;  %v260_v22 = vld [vmem:[%s1831_s25 + $0x1d0] sm:$0xff]  ;;  %v261_v23 = vld [vmem:[%s1831_s25 + $0x1d8] sm:$0xff]  ;;  %v230_v24 = vld [vmem:[%s1831_s25 + $0xe0] sm:$0xff]  ;;  %v283_v28 = vpack.c.bf16 %v229_v21, %v228_v20 }
  0x26   : > { %v231_v25 = vld [vmem:[%s1831_s25 + $0xe8] sm:$0xff]  ;;  %v262_v26 = vld [vmem:[%s1831_s25 + $0x1e0] sm:$0xff]  ;;  %v299_v29 = vpack.c.bf16 %v261_v23, %v260_v22  ;;  %v232_v32 = vld [vmem:[%s1831_s25 + $0xf0] sm:$0xff] }
  0x27   : > { %1447 = vmatmul.mubr.msk.bf16.gmra.mrb[8].mxu0 %vm313_vm2, %v275_v44  ;;  %v263_v27 = vld [vmem:[%s1831_s25 + $0x1e8] sm:$0xff]  ;;  %v284_v30 = vpack.c.bf16 %v231_v25, %v230_v24  ;;  %v233_v33 = vld [vmem:[%s1831_s25 + $0xf8] sm:$0xff]  ;;  %v264_v34 = vld [vmem:[%s1831_s25 + $0x1f0] sm:$0xff] }
  0x28   : > { %1479 = vmatmul.mubr.msk.bf16.gmra.mrb[8].mxu1 %vm313_vm2, %v291_v45  ;;  %1450 = vmatprep.mubr.msk.bf16.mxu0 %vm313_vm2, %v276_v46  ;;  %v300_v31 = vpack.c.bf16 %v263_v27, %v262_v26  ;;  %v265_v35 = vld [vmem:[%s1831_s25 + $0x1f8] sm:$0xff]  ;;  %v285_v36 = vpack.c.bf16 %v233_v33, %v232_v32  ;;  %v1932_v38 = vld [vmem:[%s2629_s2] ss:$0 sm:$0xff] }
  0x29   : > { %1482 = vmatprep.mubr.msk.bf16.mxu1 %vm313_vm2, %v292_v47  ;;  %v301_v37 = vpack.c.bf16 %v265_v35, %v264_v34  ;;  %v1937_v40 = vld [vmem:[%s2630_s3] ss:$0 sm:$0xff] }
  0x2f   : > { %1451 = vmatmul.mubr.msk.bf16.gmra.mrb[12].mxu0 %vm313_vm2, %v277_v56 }
  0x30   : > { %1483 = vmatmul.mubr.msk.bf16.gmra.mrb[12].mxu1 %vm313_vm2, %v293_v57  ;;  %1454 = vmatprep.mubr.msk.bf16.mxu0 %vm313_vm2, %v278_v58 }
  0x31   : > { %1486 = vmatprep.mubr.msk.bf16.mxu1 %vm313_vm2, %v294_v59 }
  0x37   : > { %1455 = vmatmul.mubr.msk.bf16.gmra.mrb[16].mxu0 %vm313_vm2, %v279_v4 }
  0x38   : > { %1487 = vmatmul.mubr.msk.bf16.gmra.mrb[16].mxu1 %vm313_vm2, %v295_v5  ;;  %1458 = vmatprep.mubr.msk.bf16.mxu0 %vm313_vm2, %v280_v6 }
  0x39   : > { %1490 = vmatprep.mubr.msk.bf16.mxu1 %vm313_vm2, %v296_v7 }
  0x3f   : > { %1459 = vmatmul.mubr.msk.bf16.gmra.mrb[20].mxu0 %vm313_vm2, %v281_v16 }
  0x40   : > { %1491 = vmatmul.mubr.msk.bf16.gmra.mrb[20].mxu1 %vm313_vm2, %v297_v17  ;;  %1462 = vmatprep.mubr.msk.bf16.mxu0 %vm313_vm2, %v282_v18 }
  0x41   : > { %1494 = vmatprep.mubr.msk.bf16.mxu1 %vm313_vm2, %v298_v19 }
  0x47   : > { %1463 = vmatmul.mubr.msk.bf16.gmra.mrb[24].mxu0 %vm313_vm2, %v283_v28 }
  0x48   : > { %1495 = vmatmul.mubr.msk.bf16.gmra.mrb[24].mxu1 %vm313_vm2, %v299_v29  ;;  %1466 = vmatprep.mubr.msk.bf16.mxu0 %vm313_vm2, %v284_v30 }
  0x49   : > { %1498 = vmatprep.mubr.msk.bf16.mxu1 %vm313_vm2, %v300_v31 }
  0x4f   : > { %1467 = vmatmul.mubr.msk.bf16.gmra.mrb[28].mxu0 %vm313_vm2, %v285_v36 }
  0x50   : > { %1499 = vmatmul.mubr.msk.bf16.gmra.mrb[28].mxu1 %vm313_vm2, %v301_v37 }
  0xea   : > { %v1440_v39 = vpop.f32.mrb[0].mxu0 }
  0xeb   : > { %v715_v41 = vmul.f32 %v1440_v39, %v1932_v38  ;;  %v1472_v42 = vpop.f32.mrb[0].mxu1  ;;  %v451_v43 = vpop.f32.mrb[1].mxu0 }
  0xec   : > { %v747_v44 = vmul.f32 %v1472_v42, %v1932_v38  ;;  %v713_v45 = vmul.f32 %v1932_v38, %v451_v43  ;;  %v579_v46 = vpop.f32.mrb[1].mxu1  ;;  %v1441_v47 = vpop.f32.mrb[2].mxu0 }
  0xed   : > { %v1943_v48 = vadd.f32 %v1937_v40, %v715_v41  ;;  %v745_v49 = vmul.f32 %v1932_v38, %v579_v46  ;;  %v716_v50 = vmul.f32 %v1441_v47, %v1932_v38  ;;  %v1473_v51 = vpop.f32.mrb[2].mxu1  ;;  %v454_v52 = vpop.f32.mrb[3].mxu0 }
  0xee   : > { %v1948_v53 = vadd.f32 %v1937_v40, %v747_v44  ;;  %v1951_v54 = vadd.f32 %v1937_v40, %v713_v45  ;;  %v748_v55 = vmul.f32 %v1473_v51, %v1932_v38  ;;  %v714_v56 = vmul.f32 %v1932_v38, %v454_v52  ;;  %v582_v57 = vpop.f32.mrb[3].mxu1 }
  0xef   : > { %v850_v58 = vsub.f32 0.0, %v1943_v48  ;;  %v1957_v59 = vadd.f32 %v1937_v40, %v745_v49  ;;  %v1960_v60 = vadd.f32 %v1937_v40, %v716_v50  ;;  %v746_v61 = vmul.f32 %v1932_v38, %v582_v57 }
  0xf0   : > { %v882_v62 = vsub.f32 0.0, %v1948_v53  ;;  %v848_v63 = vsub.f32 0.0, %v1951_v54  ;;  %v1966_v0 = vadd.f32 %v1937_v40, %v748_v55  ;;  %v1969_v1 = vadd.f32 %v1937_v40, %v714_v56 }
  0xf1   : > { %v916_v2 = vmul.f32 1.442695, %v850_v58  ;;  %v880_v3 = vsub.f32 0.0, %v1957_v59  ;;  %v851_v4 = vsub.f32 0.0, %v1960_v60  ;;  %v1974_v5 = vadd.f32 %v1937_v40, %v746_v61 }
  0xf2   : > { %v980_v6 = vmul.f32 1.442695, %v882_v62  ;;  %v912_v7 = vmul.f32 1.442695, %v848_v63  ;;  %v883_v8 = vsub.f32 0.0, %v1966_v0  ;;  %v849_v9 = vsub.f32 0.0, %v1969_v1 }
  0xf3   : > { %1517 = vpow2.f32 %v916_v2  ;;  %v976_v10 = vmul.f32 1.442695, %v880_v3  ;;  %v918_v11 = vmul.f32 1.442695, %v851_v4  ;;  %v881_v12 = vsub.f32 0.0, %v1974_v5  ;;  %v1444_v13 = vpop.f32.mrb[4].mxu0 }
  0xf4   : > { %1519 = vpow2.f32 %v980_v6  ;;  %v982_v14 = vmul.f32 1.442695, %v883_v8  ;;  %v914_v15 = vmul.f32 1.442695, %v849_v9  ;;  %v719_v16 = vmul.f32 %v1444_v13, %v1932_v38  ;;  %v1476_v17 = vpop.f32.mrb[4].mxu1  ;;  %v467_v18 = vpop.f32.mrb[5].mxu0 }
  0xf5   : > { %1521 = vpow2.f32 %v912_v7  ;;  %v978_v19 = vmul.f32 1.442695, %v881_v12  ;;  %v751_v20 = vmul.f32 %v1476_v17, %v1932_v38  ;;  %v717_v21 = vmul.f32 %v1932_v38, %v467_v18  ;;  %v595_v22 = vpop.f32.mrb[5].mxu1  ;;  %v1445_v23 = vpop.f32.mrb[6].mxu0 }
  0xf6   : > { %1523 = vpow2.f32 %v976_v10  ;;  %v1983_v24 = vadd.f32 %v1937_v40, %v719_v16  ;;  %v749_v25 = vmul.f32 %v1932_v38, %v595_v22  ;;  %v720_v26 = vmul.f32 %v1445_v23, %v1932_v38  ;;  %v1477_v27 = vpop.f32.mrb[6].mxu1  ;;  %v470_v28 = vpop.f32.mrb[7].mxu0 }
  0xf7   : > { %1525 = vpow2.f32 %v918_v11  ;;  %v1988_v29 = vadd.f32 %v1937_v40, %v751_v20  ;;  %v1991_v30 = vadd.f32 %v1937_v40, %v717_v21  ;;  %v752_v31 = vmul.f32 %v1477_v27, %v1932_v38  ;;  %v598_v32 = vpop.f32.mrb[7].mxu1 }
  0xf8   : > { %1527 = vpow2.f32 %v982_v14  ;;  %v854_v33 = vsub.f32 0.0, %v1983_v24  ;;  %v1996_v34 = vadd.f32 %v1937_v40, %v749_v25  ;;  %v1999_v35 = vadd.f32 %v1937_v40, %v720_v26 }
  0xf9   : > { %1529 = vpow2.f32 %v914_v15  ;;  %v886_v36 = vsub.f32 0.0, %v1988_v29  ;;  %v852_v37 = vsub.f32 0.0, %v1991_v30  ;;  %v2004_v39 = vadd.f32 %v1937_v40, %v752_v31 }
  0xfa   : > { %1531 = vpow2.f32 %v978_v19  ;;  %v924_v41 = vmul.f32 1.442695, %v854_v33  ;;  %v884_v42 = vsub.f32 0.0, %v1996_v34  ;;  %v855_v43 = vsub.f32 0.0, %v1999_v35  ;;  %v1448_v44 = vpop.f32.mrb[8].mxu0 }
  0xfb   : > { %v988_v45 = vmul.f32 1.442695, %v886_v36  ;;  %v920_v46 = vmul.f32 1.442695, %v852_v37  ;;  %v718_v47 = vmul.f32 %v1932_v38, %v470_v28  ;;  %v1480_v49 = vpop.f32.mrb[8].mxu1  ;;  %v887_v51 = vsub.f32 0.0, %v2004_v39 }
  0xfc   : > { %1533 = vpow2.f32 %v924_v41  ;;  %v984_v50 = vmul.f32 1.442695, %v884_v42  ;;  %v750_v52 = vmul.f32 %v1932_v38, %v598_v32  ;;  %v483_v55 = vpop.f32.mrb[9].mxu0  ;;  %v611_v56 = vpop.f32.mrb[9].mxu1  ;;  %v2011_v58 = vmul.f32 1.442695, %v855_v43 }
  0xfd   : > { %v1518_v57 = vpop.eup %1517  ;;  %1535 = vpow2.f32 %v988_v45  ;;  %v2014_v61 = vadd.f32 %v1937_v40, %v718_v47  ;;  %v723_v62 = vmul.f32 %v1448_v44, %v1932_v38  ;;  %v1449_v63 = vpop.f32.mrb[10].mxu0  ;;  %v755_v7 = vmul.f32 %v1480_v49, %v1932_v38 }
  0xfe   : > { %v1481_v2 = vpop.f32.mrb[10].mxu1  ;;  %v1520_v3 = vpop.eup %1519  ;;  %v1042_v4 = vadd.f32 1.0, %v1518_v57  ;;  %1537 = vpow2.f32 %v920_v46  ;;  %v2018_v6 = vadd.f32 %v1937_v40, %v750_v52  ;;  %v2031_v20 = vmul.f32 1.442695, %v887_v51 }
  0xff   : > { %v486_v8 = vpop.f32.mrb[11].mxu0  ;;  %v2021_v9 = vpop.f32.mrb[11].mxu1  ;;  %v1074_v11 = vadd.f32 1.0, %v1520_v3  ;;  %1539 = vpow2.f32 %v984_v50  ;;  %v853_v12 = vsub.f32 0.0, %v2014_v61  ;;  %v2025_v13 = vadd.f32 %v1937_v40, %v723_v62 }
 0x100   : > { %v1522_v10 = vpop.eup %1521  ;;  %1541 = vrcp.f32 %v1042_v4  ;;  %v885_v16 = vsub.f32 0.0, %v2018_v6  ;;  %v2029_v17 = vadd.f32 %v1937_v40, %v755_v7  ;;  %v721_v33 = vmul.f32 %v1932_v38, %v483_v55 }
 0x101   : > { %v1524_v14 = vpop.eup %1523  ;;  %v1040_v15 = vadd.f32 1.0, %v1522_v10  ;;  %1543 = vrcp.f32 %v1074_v11  ;;  %v858_v21 = vsub.f32 0.0, %v2025_v13  ;;  %v2034_v25 = vmul.f32 1.442695, %v853_v12 }
 0x102   : > { %v1526_v18 = vpop.eup %1525  ;;  %v1072_v19 = vadd.f32 1.0, %v1524_v14  ;;  %v2036_v26 = vmul.f32 1.442695, %v885_v16  ;;  %v2038_v27 = vpop.f32.mrb[12].mxu0  ;;  %v890_v32 = vsub.f32 0.0, %v2029_v17  ;;  %v753_v44 = vmul.f32 %v1932_v38, %v611_v56 }
 0x103   : > { %v1528_v22 = vpop.eup %1527  ;;  %1545 = vrcp.f32 %v1040_v15  ;;  %v1043_v23 = vadd.f32 1.0, %v1526_v18  ;;  %v2042_v36 = vpop.f32.mrb[12].mxu1  ;;  %v2046_v43 = vmul.f32 1.442695, %v858_v21  ;;  %v2054_v49 = vadd.f32 %v1937_v40, %v721_v33 }
 0x104   : > { %v1530_v28 = vpop.eup %1529  ;;  %1547 = vrcp.f32 %v1072_v19  ;;  %v1075_v31 = vadd.f32 1.0, %v1528_v22  ;;  %v2044_v37 = vpop.f32.mrb[13].mxu0  ;;  %v724_v50 = vmul.f32 %v1449_v63, %v1932_v38  ;;  %v2062_v57 = vadd.f32 %v1937_v40, %v753_v44 }
 0x105   : > { %v1532_v41 = vpop.eup %1531  ;;  %1549 = vrcp.f32 %v1043_v23  ;;  %v1041_v42 = vadd.f32 1.0, %v1530_v28  ;;  %v2049_v45 = vpop.f32.mrb[13].mxu1  ;;  %v756_v56 = vmul.f32 %v1481_v2, %v1932_v38  ;;  %v722_v62 = vmul.f32 %v1932_v38, %v486_v8 }
 0x106   : > { %v2051_v46 = vpop.f32.mrb[14].mxu0  ;;  %1551 = vrcp.f32 %v1075_v31  ;;  %v1073_v47 = vadd.f32 1.0, %v1532_v41  ;;  %v2057_v51 = vpop.f32.mrb[14].mxu1  ;;  %v856_v63 = vsub.f32 0.0, %v2054_v49  ;;  %v2070_v10 = vadd.f32 %v1937_v40, %v724_v50 }
 0x107   : > { %v2059_v52 = vpop.f32.mrb[15].mxu0  ;;  %v1534_v55 = vpop.eup %1533  ;;  %1553 = vrcp.f32 %v1041_v42  ;;  %v888_v14 = vsub.f32 0.0, %v2062_v57  ;;  %v2075_v2 = vadd.f32 %v1937_v40, %v756_v56  ;;  %v996_v16 = vmul.f32 1.442695, %v890_v32 }
 0x108   : > { %v2066_v3 = vpop.f32.mrb[15].mxu1  ;;  %v1536_v4 = vpop.eup %1535  ;;  %1555 = vrcp.f32 %v1073_v47  ;;  %v1046_v7 = vadd.f32 1.0, %v1534_v55  ;;  %v859_v18 = vsub.f32 0.0, %v2070_v10  ;;  %v928_v21 = vmul.f32 1.442695, %v856_v63 }
 0x109   : > { %v1538_v11 = vpop.eup %1537  ;;  %v1078_v12 = vadd.f32 1.0, %v1536_v4  ;;  %1557 = vpow2.f32 %v2011_v58  ;;  %v992_v22 = vmul.f32 1.442695, %v888_v14  ;;  %v891_v32 = vsub.f32 0.0, %v2075_v2 }
 0x10a   : > { %v1540_v8 = vpop.eup %1539  ;;  %1559 = vrcp.f32 %v1046_v7  ;;  %v1044_v15 = vadd.f32 1.0, %v1538_v11  ;;  %v2085_v23 = vpop.f32.mrb[16].mxu0  ;;  %v2090_v33 = vadd.f32 %v1937_v40, %v722_v62  ;;  %v934_v50 = vmul.f32 1.442695, %v859_v18 }
 0x10b   : > { %v1542_v19 = vpop.eup %1541  ;;  %1561 = vrcp.f32 %v1078_v12  ;;  %v1076_v58 = vadd.f32 1.0, %v1540_v8  ;;  %v2092_v41 = vpop.f32.mrb[16].mxu1  ;;  %v754_v55 = vmul.f32 %v1932_v38, %v2021_v9 }
 0x10c   : > { %v1544_v28 = vpop.eup %1543  ;;  %v1170_v31 = vmul.f32 %v1542_v19, %v1943_v48  ;;  %1563 = vrcp.f32 %v1044_v15  ;;  %v2094_v42 = vpop.f32.mrb[17].mxu0  ;;  %v857_v7 = vsub.f32 0.0, %v2090_v33 }
 0x10d   : > { %v1546_v44 = vpop.eup %1545  ;;  %v1202_v47 = vmul.f32 %v1544_v28, %v1948_v53  ;;  %1565 = vrcp.f32 %v1076_v58  ;;  %v2099_v48 = vpop.f32.mrb[17].mxu1  ;;  %v727_v53 = vmul.f32 %v2038_v27, %v1932_v38  ;;  %v725_v28 = vmul.f32 %v1932_v38, %v2044_v37 }
 0x10e   : > { %v2101_v56 = vpop.f32.mrb[18].mxu0  ;;  %v1548_v4 = vpop.eup %1547  ;;  %1235 = vst.msk [vmem:[%s2083_s6 + $0x10] sm:$0xff] %vm1232_vm3, %v1170_v31  ;;  %v1168_v62 = vmul.f32 %v1546_v44, %v1951_v54  ;;  %1567 = vpow2.f32 %v2031_v20  ;;  %v2119_v54 = vadd.f32 %v1937_v40, %v754_v55  ;;  %v759_v20 = vmul.f32 %v2042_v36, %v1932_v38 }
 0x10f   : > { %v2110_v63 = vpop.f32.mrb[18].mxu1  ;;  %v2112_v9 = vpop.f32.mrb[19].mxu0  ;;  %1267 = vst.msk [vmem:[%s2083_s6 + $0x110] sm:$0xff] %vm1232_vm3, %v1202_v47  ;;  %v1200_v12 = vmul.f32 %v1548_v4, %v1957_v59  ;;  %1569 = vpow2.f32 %v2034_v25  ;;  %v998_v59 = vmul.f32 1.442695, %v891_v32  ;;  %v2130_v25 = vadd.f32 %v1937_v40, %v727_v53 }
 0x110   : > { %v1550_v11 = vpop.eup %1549  ;;  %v2123_v27 = vpop.f32.mrb[19].mxu1  ;;  %1233 = vst.msk [vmem:[%s2083_s6] sm:$0xff] %vm1232_vm3, %v1168_v62  ;;  %1571 = vpow2.f32 %v2036_v26  ;;  %v889_v36 = vsub.f32 0.0, %v2119_v54  ;;  %v2138_v19 = vadd.f32 %v1937_v40, %v759_v20  ;;  %v930_v31 = vmul.f32 1.442695, %v857_v7 }
 0x111   : > { %v1552_v14 = vpop.eup %1551  ;;  %v1171_v8 = vmul.f32 %v1550_v11, %v1960_v60  ;;  %1265 = vst.msk [vmem:[%s2083_s6 + $0x100] sm:$0xff] %vm1232_vm3, %v1200_v12  ;;  %1573 = vpow2.f32 %v2046_v43  ;;  %v862_v58 = vsub.f32 0.0, %v2130_v25  ;;  %v2155_v37 = vadd.f32 %v1937_v40, %v725_v28 }
 0x112   : > { %v1554_v15 = vpop.eup %1553  ;;  %v1203_v18 = vmul.f32 %v1552_v14, %v1966_v0  ;;  %1575 = vpow2.f32 %v996_v16  ;;  %v994_v32 = vmul.f32 1.442695, %v889_v36  ;;  %v2149_v44 = vpop.f32.mrb[20].mxu0  ;;  %v894_v16 = vsub.f32 0.0, %v2138_v19 }
 0x113   : > { %v1556_v60 = vpop.eup %1555  ;;  %1236 = vst.msk [vmem:[%s2083_s6 + $0x18] sm:$0xff] %vm1232_vm3, %v1171_v8  ;;  %v1169_v26 = vmul.f32 %v1554_v15, %v1969_v1  ;;  %1577 = vpow2.f32 %v928_v21  ;;  %v2157_v55 = vpop.f32.mrb[20].mxu1  ;;  %v940_v62 = vmul.f32 1.442695, %v862_v58  ;;  %v860_v20 = vsub.f32 0.0, %v2155_v37 }
 0x114   : > { %v1558_v0 = vpop.eup %1557  ;;  %1268 = vst.msk [vmem:[%s2083_s6 + $0x118] sm:$0xff] %vm1232_vm3, %v1203_v18  ;;  %v1201_v43 = vmul.f32 %v1556_v60, %v1974_v5  ;;  %1579 = vpow2.f32 %v992_v22  ;;  %v2159_v4 = vpop.f32.mrb[21].mxu0  ;;  %v757_v22 = vmul.f32 %v1932_v38, %v2049_v45  ;;  %v728_v14 = vmul.f32 %v2051_v46, %v1932_v38 }
 0x115   : > { %v1560_v47 = vpop.eup %1559  ;;  %1234 = vst.msk [vmem:[%s2083_s6 + $0x8] sm:$0xff] %vm1232_vm3, %v1169_v26  ;;  %v1047_v1 = vadd.f32 1.0, %v1558_v0  ;;  %1581 = vpow2.f32 %v934_v50  ;;  %v2166_v7 = vpop.f32.mrb[21].mxu1  ;;  %v2191_v60 = vmul.f32 1.442695, %v894_v16 }
 0x116   : > { %v1562_v5 = vpop.eup %1561  ;;  %1266 = vst.msk [vmem:[%s2083_s6 + $0x108] sm:$0xff] %vm1232_vm3, %v1201_v43  ;;  %v1174_v21 = vmul.f32 %v1560_v47, %v1983_v24  ;;  %v2168_v53 = vpop.f32.mrb[22].mxu0  ;;  %v2182_v15 = vadd.f32 %v1937_v40, %v757_v22  ;;  %v726_v43 = vmul.f32 %v1932_v38, %v2059_v52 }
 0x117   : > { %v1564_v11 = vpop.eup %1563  ;;  %v1206_v12 = vmul.f32 %v1562_v5, %v1988_v29  ;;  %1583 = vrcp.f32 %v1047_v1  ;;  %v2174_v24 = vpop.f32.mrb[22].mxu1  ;;  %v760_v29 = vmul.f32 %v2057_v51, %v1932_v38  ;;  %v2207_v1 = vmul.f32 1.442695, %v860_v20 }
 0x118   : > { %v2176_v50 = vpop.f32.mrb[23].mxu0  ;;  %v1566_v45 = vpop.eup %1565  ;;  %1239 = vst.msk [vmem:[%s2083_s6 + $0x30] sm:$0xff] %vm1232_vm3, %v1174_v21  ;;  %v1172_v8 = vmul.f32 %v1564_v11, %v1991_v30  ;;  %1585 = vpow2.f32 %v998_v59  ;;  %v2194_v30 = vadd.f32 %v1937_v40, %v728_v14  ;;  %v892_v51 = vsub.f32 0.0, %v2182_v15 }
 0x119   : > { %v2186_v18 = vpop.f32.mrb[23].mxu1  ;;  %v1568_v46 = vpop.eup %1567  ;;  %1271 = vst.msk [vmem:[%s2083_s6 + $0x130] sm:$0xff] %vm1232_vm3, %v1206_v12  ;;  %v1204_v36 = vmul.f32 %v1566_v45, %v1996_v34  ;;  %1587 = vpow2.f32 %v930_v31  ;;  %v2200_v58 = vadd.f32 %v1937_v40, %v760_v29  ;;  %v758_v45 = vmul.f32 %v1932_v38, %v2066_v3 }
 0x11a   : > { %v1570_v59 = vpop.eup %1569  ;;  %1237 = vst.msk [vmem:[%s2083_s6 + $0x20] sm:$0xff] %vm1232_vm3, %v1172_v8  ;;  %v1079_v26 = vadd.f32 1.0, %v1568_v46  ;;  %1589 = vpow2.f32 %v994_v32  ;;  %v863_v0 = vsub.f32 0.0, %v2194_v30  ;;  %v2209_v32 = vmul.f32 1.442695, %v892_v51  ;;  %v2211_v16 = vpop.f32.mrb[24].mxu0 }
 0x11b   : > { %v1572_v28 = vpop.eup %1571  ;;  %1269 = vst.msk [vmem:[%s2083_s6 + $0x120] sm:$0xff] %vm1232_vm3, %v1204_v36  ;;  %v1045_v34 = vadd.f32 1.0, %v1570_v59  ;;  %1591 = vpow2.f32 %v940_v62  ;;  %v895_v22 = vsub.f32 0.0, %v2200_v58  ;;  %v2215_v62 = vadd.f32 %v1937_v40, %v726_v43  ;;  %v2217_v11 = vpop.f32.mrb[24].mxu1 }
 0x11c   : > { %v1574_v31 = vpop.eup %1573  ;;  %1593 = vrcp.f32 %v1079_v26  ;;  %v1077_v47 = vadd.f32 1.0, %v1572_v28  ;;  %v2219_v52 = vpop.f32.mrb[25].mxu0  ;;  %v2221_v14 = vmul.f32 1.442695, %v863_v0  ;;  %v731_v26 = vmul.f32 %v2085_v23, %v1932_v38 }
 0x11d   : > { %v1576_v5 = vpop.eup %1575  ;;  %1595 = vrcp.f32 %v1045_v34  ;;  %v1050_v21 = vadd.f32 1.0, %v1574_v31  ;;  %v2225_v8 = vpop.f32.mrb[25].mxu1  ;;  %v861_v59 = vsub.f32 0.0, %v2215_v62  ;;  %v2237_v3 = vadd.f32 %v1937_v40, %v758_v45 }
 0x11e   : > { %v1578_v12 = vpop.eup %1577  ;;  %1597 = vrcp.f32 %v1077_v47  ;;  %v1082_v20 = vadd.f32 1.0, %v1576_v5  ;;  %v2227_v29 = vpop.f32.mrb[26].mxu0  ;;  %v763_v43 = vmul.f32 %v2092_v41, %v1932_v38  ;;  %v2243_v23 = vmul.f32 1.442695, %v895_v22 }
 0x11f   : > { %v1580_v46 = vpop.eup %1579  ;;  %1599 = vrcp.f32 %v1050_v21  ;;  %v1048_v36 = vadd.f32 1.0, %v1578_v12  ;;  %v2232_v51 = vpop.f32.mrb[26].mxu1  ;;  %v2246_v21 = vadd.f32 %v1937_v40, %v731_v26  ;;  %v893_v45 = vsub.f32 0.0, %v2237_v3 }
 0x120   : > { %2632 = vst [vmem:[#allocation2_spill] sm:$0xff] %v2232_v51  ;;  %v2234_v28 = vpop.f32.mrb[27].mxu0  ;;  %v1582_v34 = vpop.eup %1581  ;;  %1601 = vrcp.f32 %v1082_v20  ;;  %v1080_v0 = vadd.f32 1.0, %v1580_v46  ;;  %v2251_v46 = vadd.f32 %v1937_v40, %v763_v43  ;;  %v729_v22 = vmul.f32 %v1932_v38, %v2094_v42 }
 0x121   : > { %2633 = vst [vmem:[#allocation3_spill] sm:$0xff] %v2234_v28  ;;  %v2241_v31 = vpop.f32.mrb[27].mxu1  ;;  %v1584_v47 = vpop.eup %1583  ;;  %1603 = vrcp.f32 %v1048_v36  ;;  %v1051_v5 = vadd.f32 1.0, %v1582_v34  ;;  %v866_v36 = vsub.f32 0.0, %v2246_v21 }
 0x122   : > { %2634 = vst [vmem:[#allocation4_spill] sm:$0xff] %v2241_v31  ;;  %v1586_v12 = vpop.eup %1585  ;;  %v1175_v20 = vmul.f32 %v1584_v47, %v1999_v35  ;;  %1605 = vrcp.f32 %v1080_v0  ;;  %v938_v35 = vmul.f32 1.442695, %v861_v59  ;;  %v1002_v0 = vmul.f32 1.442695, %v893_v45  ;;  %v2259_v47 = vpop.f32.mrb[28].mxu0 }
 0x123   : > { %v1588_v41 = vpop.eup %1587  ;;  %1607 = vrcp.f32 %v1051_v5  ;;  %v1083_v31 = vadd.f32 1.0, %v1586_v12  ;;  %v898_v5 = vsub.f32 0.0, %v2251_v46  ;;  %v2263_v12 = vadd.f32 %v1937_v40, %v729_v22  ;;  %v2265_v51 = vpop.f32.mrb[28].mxu1 }
 0x124   : > { %v1590_v34 = vpop.eup %1589  ;;  %1240 = vst.msk [vmem:[%s2083_s6 + $0x38] sm:$0xff] %vm1232_vm3, %v1175_v20  ;;  %v1049_v26 = vadd.f32 1.0, %v1588_v41  ;;  %1609 = vpow2.f32 %v2191_v60  ;;  %2635 = vst [vmem:[#allocation5_spill] sm:$0xff] %v2265_v51  ;;  %v2267_v42 = vpop.f32.mrb[29].mxu0  ;;  %v948_v60 = vmul.f32 1.442695, %v866_v36  ;;  %v761_v59 = vmul.f32 %v1932_v38, %v2099_v48 }
 0x125   : > { %v1592_v43 = vpop.eup %1591  ;;  %1611 = vrcp.f32 %v1083_v31  ;;  %v1081_v28 = vadd.f32 1.0, %v1590_v34  ;;  %2636 = vst [vmem:[#allocation6_spill] sm:$0xff] %v2267_v42  ;;  %v2271_v45 = vpop.f32.mrb[29].mxu1  ;;  %v864_v51 = vsub.f32 0.0, %v2263_v12  ;;  %v732_v42 = vmul.f32 %v2101_v56, %v1932_v38 }
 0x126   : > { %v1594_v20 = vpop.eup %1593  ;;  %1613 = vrcp.f32 %v1049_v26  ;;  %v1054_v41 = vadd.f32 1.0, %v1592_v43  ;;  %v2273_v31 = vpop.f32.mrb[30].mxu0 }
 0x127   : > { %2637 = vst [vmem:[#allocation7_spill] sm:$0xff] %v2273_v31  ;;  %v1596_v34 = vpop.eup %1595  ;;  %v1207_v22 = vmul.f32 %v1594_v20, %v2004_v39  ;;  %1615 = vrcp.f32 %v1081_v28  ;;  %v2279_v26 = vpop.f32.mrb[30].mxu1  ;;  %v2285_v31 = vadd.f32 %v1937_v40, %v761_v59  ;;  %v764_v39 = vmul.f32 %v2110_v63, %v1932_v38 }
 0x128   : > { %v2281_v36 = vpop.f32.mrb[31].mxu0  ;;  %v1598_v48 = vpop.eup %1597  ;;  %v1173_v43 = vmul.f32 %v1596_v34, %v2014_v61  ;;  %1617 = vrcp.f32 %v1054_v41  ;;  %v2296_v61 = vadd.f32 %v1937_v40, %v732_v42 }
 0x129   : > { %2638 = vst [vmem:[#allocation8_spill] sm:$0xff] %v2281_v36  ;;  %v2289_v28 = vpop.f32.mrb[31].mxu1  ;;  %v1600_v20 = vpop.eup %1599  ;;  %1272 = vst.msk [vmem:[%s2083_s6 + $0x138] sm:$0xff] %vm1232_vm3, %v1207_v22  ;;  %v1205_v56 = vmul.f32 %v1598_v48, %v2018_v6  ;;  %1619 = vpow2.f32 %v2207_v1  ;;  %v1012_v36 = vmul.f32 1.442695, %v898_v5  ;;  %v896_v63 = vsub.f32 0.0, %v2285_v31 }
 0x12a   : > { %v1602_v41 = vpop.eup %1601  ;;  %1238 = vst.msk [vmem:[%s2083_s6 + $0x28] sm:$0xff] %vm1232_vm3, %v1173_v43  ;;  %v1178_v59 = vmul.f32 %v1600_v20, %v2025_v13  ;;  %1621 = vpow2.f32 %v2209_v32  ;;  %v2304_v34 = vadd.f32 %v1937_v40, %v764_v39  ;;  %v867_v5 = vsub.f32 0.0, %v2296_v61 }
 0x12b   : > { %v1604_v6 = vpop.eup %1603  ;;  %1270 = vst.msk [vmem:[%s2083_s6 + $0x128] sm:$0xff] %vm1232_vm3, %v1205_v56  ;;  %v1210_v1 = vmul.f32 %v1602_v41, %v2029_v17  ;;  %1623 = vpow2.f32 %v2221_v14  ;;  %v730_v13 = vmul.f32 %v1932_v38, %v2112_v9  ;;  %v944_v22 = vmul.f32 1.442695, %v864_v51 }
 0x12c   : > { %v1606_v32 = vpop.eup %1605  ;;  %1243 = vst.msk [vmem:[%s2083_s6 + $0x50] sm:$0xff] %vm1232_vm3, %v1178_v59  ;;  %v1176_v42 = vmul.f32 %v1604_v6, %v2054_v49  ;;  %1625 = vpow2.f32 %v2243_v23  ;;  %v1008_v48 = vmul.f32 1.442695, %v896_v63  ;;  %v899_v14 = vsub.f32 0.0, %v2304_v34 }
 0x12d   : > { %v1608_v43 = vpop.eup %1607  ;;  %1275 = vst.msk [vmem:[%s2083_s6 + $0x150] sm:$0xff] %vm1232_vm3, %v1210_v1  ;;  %v1208_v17 = vmul.f32 %v1606_v32, %v2062_v57  ;;  %1627 = vpow2.f32 %v938_v35  ;;  %v2322_v9 = vadd.f32 %v1937_v40, %v730_v13  ;;  %v950_v51 = vmul.f32 1.442695, %v867_v5 }
 0x12e   : > { %v1610_v39 = vpop.eup %1609  ;;  %1241 = vst.msk [vmem:[%s2083_s6 + $0x40] sm:$0xff] %vm1232_vm3, %v1176_v42  ;;  %v1179_v49 = vmul.f32 %v1608_v43, %v2070_v10  ;;  %1629 = vpow2.f32 %v1002_v0  ;;  %v762_v23 = vmul.f32 %v1932_v38, %v2123_v27  ;;  %v735_v56 = vmul.f32 %v2149_v44, %v1932_v38 }
 0x12f   : > { %v1612_v20 = vpop.eup %1611  ;;  %1273 = vst.msk [vmem:[%s2083_s6 + $0x140] sm:$0xff] %vm1232_vm3, %v1208_v17  ;;  %v1086_v57 = vadd.f32 1.0, %v1610_v39  ;;  %1631 = vpow2.f32 %v948_v60  ;;  %v865_v35 = vsub.f32 0.0, %v2322_v9  ;;  %v767_v0 = vmul.f32 %v2157_v55, %v1932_v38 }
 0x130   : > { %v1614_v41 = vpop.eup %1613  ;;  %1244 = vst.msk [vmem:[%s2083_s6 + $0x58] sm:$0xff] %vm1232_vm3, %v1179_v49  ;;  %v1211_v10 = vmul.f32 %v1612_v20, %v2075_v2  ;;  %1633 = vpow2.f32 %v1012_v36  ;;  %v2338_v27 = vadd.f32 %v1937_v40, %v762_v23  ;;  %v1014_v63 = vmul.f32 1.442695, %v899_v14 }
 0x131   : > { %v1616_v59 = vpop.eup %1615  ;;  %v1177_v60 = vmul.f32 %v1614_v41, %v2090_v33  ;;  %1635 = vrcp.f32 %v1086_v57  ;;  %v2344_v44 = vadd.f32 %v1937_v40, %v735_v56  ;;  %v2351_v55 = vadd.f32 %v1937_v40, %v767_v0 }
 0x132   : > { %v1618_v6 = vpop.eup %1617  ;;  %1276 = vst.msk [vmem:[%s2083_s6 + $0x158] sm:$0xff] %vm1232_vm3, %v1211_v10  ;;  %v1209_v2 = vmul.f32 %v1616_v59, %v2119_v54  ;;  %1637 = vpow2.f32 %v944_v22  ;;  %v897_v36 = vsub.f32 0.0, %v2338_v27  ;;  %v733_v5 = vmul.f32 %v1932_v38, %v2159_v4 }
 0x133   : > { %v1620_v1 = vpop.eup %1619  ;;  %1242 = vst.msk [vmem:[%s2083_s6 + $0x48] sm:$0xff] %vm1232_vm3, %v1177_v60  ;;  %v1182_v33 = vmul.f32 %v1618_v6, %v2130_v25  ;;  %1639 = vpow2.f32 %v1008_v48  ;;  %v946_v32 = vmul.f32 1.442695, %v865_v35  ;;  %v870_v42 = vsub.f32 0.0, %v2344_v44 }
 0x134   : > { %v1622_v13 = vpop.eup %1621  ;;  %1274 = vst.msk [vmem:[%s2083_s6 + $0x148] sm:$0xff] %vm1232_vm3, %v1209_v2  ;;  %v1052_v54 = vadd.f32 1.0, %v1620_v1  ;;  %1641 = vpow2.f32 %v950_v51  ;;  %v2363_v17 = vmul.f32 1.442695, %v897_v36  ;;  %v2366_v25 = vadd.f32 %v1937_v40, %v733_v5 }
 0x135   : > { %v1624_v22 = vpop.eup %1623  ;;  %1247 = vst.msk [vmem:[%s2083_s6 + $0x70] sm:$0xff] %vm1232_vm3, %v1182_v33  ;;  %v1084_v43 = vadd.f32 1.0, %v1622_v13  ;;  %1643 = vpow2.f32 %v1014_v63  ;;  %v902_v14 = vsub.f32 0.0, %v2351_v55  ;;  %v765_v39 = vmul.f32 %v1932_v38, %v2166_v7 }
 0x136   : > { %v1626_v48 = vpop.eup %1625  ;;  %1645 = vrcp.f32 %v1052_v54  ;;  %v1055_v4 = vadd.f32 1.0, %v1624_v22  ;;  %v868_v23 = vsub.f32 0.0, %v2366_v25  ;;  %v736_v20 = vmul.f32 %v2168_v53, %v1932_v38 }
 0x137   : > { %v1628_v49 = vpop.eup %1627  ;;  %1647 = vrcp.f32 %v1084_v43  ;;  %v1087_v51 = vadd.f32 1.0, %v1626_v48  ;;  %v2375_v56 = vadd.f32 %v1937_v40, %v765_v39  ;;  %v768_v41 = vmul.f32 %v2174_v24, %v1932_v38 }
 0x138   : > { %v1630_v57 = vpop.eup %1629  ;;  %1649 = vrcp.f32 %v1055_v4  ;;  %v1053_v35 = vadd.f32 1.0, %v1628_v49  ;;  %v956_v0 = vmul.f32 1.442695, %v870_v42  ;;  %v2380_v59 = vadd.f32 %v1937_v40, %v736_v20 }
 0x139   : > { %v1632_v10 = vpop.eup %1631  ;;  %1651 = vrcp.f32 %v1087_v51  ;;  %v1085_v7 = vadd.f32 1.0, %v1630_v57  ;;  %v900_v53 = vsub.f32 0.0, %v2375_v56  ;;  %v2384_v6 = vadd.f32 %v1937_v40, %v768_v41 }
 0x13a   : > { %v1634_v60 = vpop.eup %1633  ;;  %1653 = vrcp.f32 %v1053_v35  ;;  %v1058_v63 = vadd.f32 1.0, %v1632_v10  ;;  %v1020_v24 = vmul.f32 1.442695, %v902_v14  ;;  %v734_v1 = vmul.f32 %v1932_v38, %v2176_v50 }
 0x13b   : > { %v1636_v2 = vpop.eup %1635  ;;  %1655 = vrcp.f32 %v1085_v7  ;;  %v1090_v36 = vadd.f32 1.0, %v1634_v60  ;;  %v952_v13 = vmul.f32 1.442695, %v868_v23  ;;  %v871_v54 = vsub.f32 0.0, %v2380_v59 }
 0x13c   : > { %v1638_v33 = vpop.eup %1637  ;;  %v1214_v5 = vmul.f32 %v1636_v2, %v2138_v19  ;;  %1657 = vrcp.f32 %v1058_v63  ;;  %v1016_v43 = vmul.f32 1.442695, %v900_v53  ;;  %v2391_v48 = vadd.f32 %v1937_v40, %v734_v1 }
 0x13d   : > { %v1640_v42 = vpop.eup %1639  ;;  %1659 = vrcp.f32 %v1090_v36  ;;  %v1056_v22 = vadd.f32 1.0, %v1638_v33  ;;  %v903_v50 = vsub.f32 0.0, %v2384_v6  ;;  %v766_v19 = vmul.f32 %v1932_v38, %v2186_v18 }
 0x13e   : > { %v1642_v4 = vpop.eup %1641  ;;  %1279 = vst.msk [vmem:[%s2083_s6 + $0x170] sm:$0xff] %vm1232_vm3, %v1214_v5  ;;  %v1088_v14 = vadd.f32 1.0, %v1640_v42  ;;  %1661 = vpow2.f32 %v946_v32  ;;  %v869_v51 = vsub.f32 0.0, %v2391_v48  ;;  %v739_v23 = vmul.f32 %v2211_v16, %v1932_v38 }
 0x13f   : > { %v1644_v39 = vpop.eup %1643  ;;  %1663 = vrcp.f32 %v1056_v22  ;;  %v1059_v49 = vadd.f32 1.0, %v1642_v4  ;;  %v2402_v35 = vadd.f32 %v1937_v40, %v766_v19  ;;  %v771_v32 = vmul.f32 %v2217_v11, %v1932_v38 }
 0x140   : > { %v1646_v20 = vpop.eup %1645  ;;  %1665 = vrcp.f32 %v1088_v14  ;;  %v1091_v57 = vadd.f32 1.0, %v1644_v39  ;;  %v958_v10 = vmul.f32 1.442695, %v871_v54  ;;  %v2408_v7 = vadd.f32 %v1937_v40, %v739_v23 }
 0x141   : > { %v1648_v41 = vpop.eup %1647  ;;  %v1180_v18 = vmul.f32 %v1646_v20, %v2155_v37  ;;  %1667 = vrcp.f32 %v1059_v49  ;;  %v901_v63 = vsub.f32 0.0, %v2402_v35  ;;  %v2413_v53 = vadd.f32 %v1937_v40, %v771_v32 }
 0x142   : > { %v1650_v16 = vpop.eup %1649  ;;  %v1212_v60 = vmul.f32 %v1648_v41, %v2182_v15  ;;  %1669 = vrcp.f32 %v1091_v57  ;;  %v1022_v2 = vmul.f32 1.442695, %v903_v50  ;;  %v737_v36 = vmul.f32 %v1932_v38, %v2219_v52  ;;  %v2432_v38 = vld [vmem:[%s2630_s3] ss:$0 sm:$0xff]  ;;  %v2640_v41 = vld [vmem:[#allocation3_spill] sm:$0xff] }
 0x143   : > { %v1652_v11 = vpop.eup %1651  ;;  %1245 = vst.msk [vmem:[%s2083_s6 + $0x60] sm:$0xff] %vm1232_vm3, %v1180_v18  ;;  %v1183_v37 = vmul.f32 %v1650_v16, %v2194_v30  ;;  %1671 = vpow2.f32 %v2363_v17  ;;  %v954_v40 = vmul.f32 1.442695, %v869_v51  ;;  %v874_v33 = vsub.f32 0.0, %v2408_v7 }
 0x144   : > { %v1654_v15 = vpop.eup %1653  ;;  %1277 = vst.msk [vmem:[%s2083_s6 + $0x160] sm:$0xff] %vm1232_vm3, %v1212_v60  ;;  %v1215_v1 = vmul.f32 %v1652_v11, %v2200_v58  ;;  %1673 = vpow2.f32 %v956_v0  ;;  %v906_v17 = vsub.f32 0.0, %v2413_v53  ;;  %v2435_v58 = vadd.f32 %v2432_v38, %v737_v36 }
 0x145   : > { %v1656_v5 = vpop.eup %1655  ;;  %1248 = vst.msk [vmem:[%s2083_s6 + $0x78] sm:$0xff] %vm1232_vm3, %v1183_v37  ;;  %v1181_v30 = vmul.f32 %v1654_v15, %v2215_v62  ;;  %1675 = vpow2.f32 %v1020_v24  ;;  %v1018_v54 = vmul.f32 1.442695, %v901_v63  ;;  %v2443_v62 = vld [vmem:[%s2629_s2] ss:$0 sm:$0xff] }
 0x146   : > { %v1658_v52 = vpop.eup %1657  ;;  %1280 = vst.msk [vmem:[%s2083_s6 + $0x178] sm:$0xff] %vm1232_vm3, %v1215_v1  ;;  %v1213_v0 = vmul.f32 %v1656_v5, %v2237_v3  ;;  %1677 = vpow2.f32 %v952_v13  ;;  %v769_v24 = vmul.f32 %v2443_v62, %v2225_v8  ;;  %v872_v3 = vsub.f32 0.0, %v2435_v58  ;;  %v2639_v8 = vld [vmem:[#allocation2_spill] sm:$0xff] }
 0x147   : > { %v1660_v42 = vpop.eup %1659  ;;  %1246 = vst.msk [vmem:[%s2083_s6 + $0x68] sm:$0xff] %vm1232_vm3, %v1181_v30  ;;  %v1186_v22 = vmul.f32 %v1658_v52, %v2246_v21  ;;  %1679 = vpow2.f32 %v1016_v43  ;;  %v740_v13 = vmul.f32 %v2443_v62, %v2227_v29  ;;  %v964_v50 = vmul.f32 1.442695, %v874_v33 }
 0x148   : > { %v1662_v4 = vpop.eup %1661  ;;  %1278 = vst.msk [vmem:[%s2083_s6 + $0x168] sm:$0xff] %vm1232_vm3, %v1213_v0  ;;  %v1218_v14 = vmul.f32 %v1660_v42, %v2251_v46  ;;  %1681 = vpow2.f32 %v958_v10  ;;  %v772_v19 = vmul.f32 %v2443_v62, %v2639_v8  ;;  %v1028_v43 = vmul.f32 1.442695, %v906_v17  ;;  %v2642_v17 = vld [vmem:[#allocation5_spill] sm:$0xff]  ;;  %v2643_v8 = vld [vmem:[#allocation6_spill] sm:$0xff] }
 0x149   : > { %v1664_v39 = vpop.eup %1663  ;;  %1251 = vst.msk [vmem:[%s2083_s6 + $0x90] sm:$0xff] %vm1232_vm3, %v1186_v22  ;;  %v1057_v21 = vadd.f32 1.0, %v1662_v4  ;;  %1683 = vpow2.f32 %v1022_v2  ;;  %v2461_v49 = vadd.f32 %v2432_v38, %v769_v24  ;;  %v960_v51 = vmul.f32 1.442695, %v872_v3 }
 0x14a   : > { %v1666_v29 = vpop.eup %1665  ;;  %1283 = vst.msk [vmem:[%s2083_s6 + $0x190] sm:$0xff] %vm1232_vm3, %v1218_v14  ;;  %v1184_v46 = vmul.f32 %v1664_v39, %v2263_v12  ;;  %1685 = vpow2.f32 %v954_v40  ;;  %v2467_v23 = vadd.f32 %v2432_v38, %v740_v13  ;;  %v2471_v32 = vadd.f32 %v2432_v38, %v772_v19 }
 0x14b   : > { %v1668_v20 = vpop.eup %1667  ;;  %v1216_v57 = vmul.f32 %v1666_v29, %v2285_v31  ;;  %1687 = vrcp.f32 %v1057_v21  ;;  %v738_v18 = vmul.f32 %v2443_v62, %v2640_v41  ;;  %v904_v31 = vsub.f32 0.0, %v2461_v49 }
 0x14c   : > { %v1670_v10 = vpop.eup %1669  ;;  %1249 = vst.msk [vmem:[%s2083_s6 + $0x80] sm:$0xff] %vm1232_vm3, %v1184_v46  ;;  %v1187_v12 = vmul.f32 %v1668_v20, %v2296_v61  ;;  %1689 = vpow2.f32 %v1018_v54  ;;  %v875_v2 = vsub.f32 0.0, %v2467_v23  ;;  %v2641_v61 = vld [vmem:[#allocation4_spill] sm:$0xff]  ;;  %v907_v1 = vsub.f32 0.0, %v2471_v32 }
 0x14d   : > { %v1672_v16 = vpop.eup %1671  ;;  %1281 = vst.msk [vmem:[%s2083_s6 + $0x180] sm:$0xff] %vm1232_vm3, %v1216_v57  ;;  %v1219_v60 = vmul.f32 %v1670_v10, %v2304_v34  ;;  %1691 = vpow2.f32 %v964_v50  ;;  %v2483_v63 = vadd.f32 %v2432_v38, %v738_v18  ;;  %v770_v36 = vmul.f32 %v2443_v62, %v2641_v61 }
 0x14e   : > { %v1674_v11 = vpop.eup %1673  ;;  %1252 = vst.msk [vmem:[%s2083_s6 + $0x98] sm:$0xff] %vm1232_vm3, %v1187_v12  ;;  %v1089_v37 = vadd.f32 1.0, %v1672_v16  ;;  %1693 = vpow2.f32 %v1028_v43  ;;  %v743_v40 = vmul.f32 %v2443_v62, %v2259_v47  ;;  %v775_v52 = vmul.f32 %v2443_v62, %v2642_v17 }
 0x14f   : > { %v1676_v15 = vpop.eup %1675  ;;  %1284 = vst.msk [vmem:[%s2083_s6 + $0x198] sm:$0xff] %vm1232_vm3, %v1219_v60  ;;  %v1062_v34 = vadd.f32 1.0, %v1674_v11  ;;  %1695 = vpow2.f32 %v960_v51  ;;  %v873_v30 = vsub.f32 0.0, %v2483_v63  ;;  %v1024_v24 = vmul.f32 1.442695, %v904_v31  ;;  %v2644_v11 = vld [vmem:[#allocation7_spill] sm:$0xff] }
 0x150   : > { %v1678_v33 = vpop.eup %1677  ;;  %1697 = vrcp.f32 %v1089_v37  ;;  %v1094_v5 = vadd.f32 1.0, %v1676_v15  ;;  %v2499_v42 = vadd.f32 %v2432_v38, %v770_v36  ;;  %v966_v13 = vmul.f32 1.442695, %v875_v2 }
 0x151   : > { %v1680_v0 = vpop.eup %1679  ;;  %1699 = vrcp.f32 %v1062_v34  ;;  %v1060_v54 = vadd.f32 1.0, %v1678_v33  ;;  %v2502_v47 = vadd.f32 %v2432_v38, %v743_v40  ;;  %v2505_v50 = vadd.f32 %v2432_v38, %v775_v52 }
 0x152   : > { %v1682_v22 = vpop.eup %1681  ;;  %1701 = vrcp.f32 %v1094_v5  ;;  %v1092_v3 = vadd.f32 1.0, %v1680_v0  ;;  %v741_v19 = vmul.f32 %v2443_v62, %v2643_v8  ;;  %v1030_v43 = vmul.f32 1.442695, %v907_v1  ;;  %v2645_v0 = vld [vmem:[#allocation8_spill] sm:$0xff] }
 0x153   : > { %v1684_v4 = vpop.eup %1683  ;;  %1703 = vrcp.f32 %v1060_v54  ;;  %v1063_v14 = vadd.f32 1.0, %v1682_v22  ;;  %v962_v29 = vmul.f32 1.442695, %v873_v30  ;;  %v905_v20 = vsub.f32 0.0, %v2499_v42 }
 0x154   : > { %v1686_v39 = vpop.eup %1685  ;;  %1705 = vrcp.f32 %v1092_v3  ;;  %v1095_v21 = vadd.f32 1.0, %v1684_v4  ;;  %v2511_v57 = vadd.f32 %v2432_v38, %v741_v19  ;;  %v878_v10 = vsub.f32 0.0, %v2502_v47 }
 0x155   : > { %v1688_v46 = vpop.eup %1687  ;;  %1707 = vrcp.f32 %v1063_v14  ;;  %v1061_v51 = vadd.f32 1.0, %v1686_v39  ;;  %v773_v12 = vmul.f32 %v2443_v62, %v2271_v45  ;;  %v910_v31 = vsub.f32 0.0, %v2505_v50 }
 0x156   : > { %v1690_v41 = vpop.eup %1689  ;;  %v1185_v18 = vmul.f32 %v1688_v46, %v2322_v9  ;;  %1709 = vrcp.f32 %v1095_v21  ;;  %v744_v37 = vmul.f32 %v2443_v62, %v2644_v11  ;;  %v776_v36 = vmul.f32 %v2443_v62, %v2279_v26 }
 0x157   : > { %v1692_v16 = vpop.eup %1691  ;;  %1711 = vrcp.f32 %v1061_v51  ;;  %v1093_v60 = vadd.f32 1.0, %v1690_v41  ;;  %v2523_v9 = vadd.f32 %v2432_v38, %v773_v12  ;;  %v1026_v34 = vmul.f32 1.442695, %v905_v20 }
 0x158   : > { %v1694_v2 = vpop.eup %1693  ;;  %1250 = vst.msk [vmem:[%s2083_s6 + $0x88] sm:$0xff] %vm1232_vm3, %v1185_v18  ;;  %v1066_v61 = vadd.f32 1.0, %v1692_v16  ;;  %1713 = vpow2.f32 %v1024_v24  ;;  %v876_v1 = vsub.f32 0.0, %v2511_v57  ;;  %v2530_v30 = vadd.f32 %v2432_v38, %v744_v37 }
 0x159   : > { %v1696_v45 = vpop.eup %1695  ;;  %1715 = vrcp.f32 %v1093_v60  ;;  %v1098_v15 = vadd.f32 1.0, %v1694_v2  ;;  %v908_v5 = vsub.f32 0.0, %v2523_v9  ;;  %v2534_v26 = vadd.f32 %v2432_v38, %v776_v36 }
 0x15a   : > { %v1698_v40 = vpop.eup %1697  ;;  %1717 = vrcp.f32 %v1066_v61  ;;  %v1064_v33 = vadd.f32 1.0, %v1696_v45  ;;  %v742_v54 = vmul.f32 %v2443_v62, %v2645_v0  ;;  %v972_v3 = vmul.f32 1.442695, %v878_v10 }
 0x15b   : > { %v1700_v17 = vpop.eup %1699  ;;  %v1217_v52 = vmul.f32 %v1698_v40, %v2338_v27  ;;  %1719 = vrcp.f32 %v1098_v15  ;;  %v1036_v4 = vmul.f32 1.442695, %v910_v31  ;;  %v968_v8 = vmul.f32 1.442695, %v876_v1 }
 0x15c   : > { %v1702_v24 = vpop.eup %1701  ;;  %v1190_v22 = vmul.f32 %v1700_v17, %v2344_v44  ;;  %1721 = vrcp.f32 %v1064_v33  ;;  %v2543_v19 = vadd.f32 %v2432_v38, %v742_v54  ;;  %v879_v21 = vsub.f32 0.0, %v2530_v30 }
 0x15d   : > { %v1704_v14 = vpop.eup %1703  ;;  %1282 = vst.msk [vmem:[%s2083_s6 + $0x188] sm:$0xff] %vm1232_vm3, %v1217_v52  ;;  %v1222_v27 = vmul.f32 %v1702_v24, %v2351_v55  ;;  %1723 = vpow2.f32 %v966_v13  ;;  %v774_v46 = vmul.f32 %v2443_v62, %v2289_v28  ;;  %v1032_v13 = vmul.f32 1.442695, %v908_v5 }
 0x15e   : > { %v1706_v39 = vpop.eup %1705  ;;  %1255 = vst.msk [vmem:[%s2083_s6 + $0xb0] sm:$0xff] %vm1232_vm3, %v1190_v22  ;;  %v1188_v44 = vmul.f32 %v1704_v14, %v2366_v25  ;;  %1725 = vpow2.f32 %v1030_v43  ;;  %v911_v20 = vsub.f32 0.0, %v2534_v26  ;;  %v877_v43 = vsub.f32 0.0, %v2543_v19 }
 0x15f   : > { %v1708_v51 = vpop.eup %1707  ;;  %1287 = vst.msk [vmem:[%s2083_s6 + $0x1b0] sm:$0xff] %vm1232_vm3, %v1222_v27  ;;  %v1220_v55 = vmul.f32 %v1706_v39, %v2375_v56  ;;  %1727 = vpow2.f32 %v962_v29  ;;  %v2560_v28 = vadd.f32 %v2432_v38, %v774_v46 }
 0x160   : > { %v1710_v41 = vpop.eup %1709  ;;  %1253 = vst.msk [vmem:[%s2083_s6 + $0xa0] sm:$0xff] %vm1232_vm3, %v1188_v44  ;;  %v1191_v25 = vmul.f32 %v1708_v51, %v2380_v59  ;;  %1729 = vpow2.f32 %v1026_v34  ;;  %v974_v59 = vmul.f32 1.442695, %v879_v21  ;;  %v1038_v16 = vmul.f32 1.442695, %v911_v20 }
 0x161   : > { %v1712_v62 = vpop.eup %1711  ;;  %1285 = vst.msk [vmem:[%s2083_s6 + $0x1a0] sm:$0xff] %vm1232_vm3, %v1220_v55  ;;  %v1223_v56 = vmul.f32 %v1710_v41, %v2384_v6  ;;  %1731 = vpow2.f32 %v972_v3  ;;  %v909_v10 = vsub.f32 0.0, %v2560_v28 }
 0x162   : > { %v1714_v29 = vpop.eup %1713  ;;  %1256 = vst.msk [vmem:[%s2083_s6 + $0xb8] sm:$0xff] %vm1232_vm3, %v1191_v25  ;;  %v1189_v18 = vmul.f32 %v1712_v62, %v2391_v48  ;;  %1733 = vpow2.f32 %v1036_v4  ;;  %v970_v48 = vmul.f32 1.442695, %v877_v43 }
 0x163   : > { %v1716_v12 = vpop.eup %1715  ;;  %1288 = vst.msk [vmem:[%s2083_s6 + $0x1b8] sm:$0xff] %vm1232_vm3, %v1223_v56  ;;  %v1096_v38 = vadd.f32 1.0, %v1714_v29  ;;  %1735 = vpow2.f32 %v968_v8  ;;  %v1034_v37 = vmul.f32 1.442695, %v909_v10 }
 0x164   : > { %v1718_v60 = vpop.eup %1717  ;;  %1254 = vst.msk [vmem:[%s2083_s6 + $0xa8] sm:$0xff] %vm1232_vm3, %v1189_v18  ;;  %v1221_v6 = vmul.f32 %v1716_v12, %v2402_v35  ;;  %1737 = vpow2.f32 %v1032_v13 }
 0x165   : > { %v1720_v31 = vpop.eup %1719  ;;  %v1194_v11 = vmul.f32 %v1718_v60, %v2408_v7  ;;  %1739 = vrcp.f32 %v1096_v38 }
 0x166   : > { %v1722_v2 = vpop.eup %1721  ;;  %1286 = vst.msk [vmem:[%s2083_s6 + $0x1a8] sm:$0xff] %vm1232_vm3, %v1221_v6  ;;  %v1226_v61 = vmul.f32 %v1720_v31, %v2413_v53  ;;  %1741 = vpow2.f32 %v974_v59 }
 0x167   : > { %v1724_v36 = vpop.eup %1723  ;;  %1259 = vst.msk [vmem:[%s2083_s6 + $0xd0] sm:$0xff] %vm1232_vm3, %v1194_v11  ;;  %v1192_v35 = vmul.f32 %v1722_v2, %v2435_v58  ;;  %1743 = vpow2.f32 %v1038_v16 }
 0x168   : > { %v1726_v45 = vpop.eup %1725  ;;  %1291 = vst.msk [vmem:[%s2083_s6 + $0x1d0] sm:$0xff] %vm1232_vm3, %v1226_v61  ;;  %v1067_v15 = vadd.f32 1.0, %v1724_v36  ;;  %1745 = vpow2.f32 %v970_v48 }
 0x169   : > { %v1728_v7 = vpop.eup %1727  ;;  %1257 = vst.msk [vmem:[%s2083_s6 + $0xc0] sm:$0xff] %vm1232_vm3, %v1192_v35  ;;  %v1099_v34 = vadd.f32 1.0, %v1726_v45  ;;  %1747 = vpow2.f32 %v1034_v37 }
 0x16a   : > { %v1730_v1 = vpop.eup %1729  ;;  %1749 = vrcp.f32 %v1067_v15  ;;  %v1065_v53 = vadd.f32 1.0, %v1728_v7 }
 0x16b   : > { %v1732_v40 = vpop.eup %1731  ;;  %1751 = vrcp.f32 %v1099_v34  ;;  %v1097_v33 = vadd.f32 1.0, %v1730_v1 }
 0x16c   : > { %v1734_v5 = vpop.eup %1733  ;;  %1753 = vrcp.f32 %v1065_v53  ;;  %v1070_v58 = vadd.f32 1.0, %v1732_v40 }
 0x16d   : > { %v1736_v17 = vpop.eup %1735  ;;  %1755 = vrcp.f32 %v1097_v33  ;;  %v1102_v52 = vadd.f32 1.0, %v1734_v5 }
 0x16e   : > { %v1738_v0 = vpop.eup %1737  ;;  %1757 = vrcp.f32 %v1070_v58  ;;  %v1068_v54 = vadd.f32 1.0, %v1736_v17 }
 0x16f   : > { %v1740_v24 = vpop.eup %1739  ;;  %1759 = vrcp.f32 %v1102_v52  ;;  %v1100_v22 = vadd.f32 1.0, %v1738_v0 }
 0x170   : > { %v1742_v3 = vpop.eup %1741  ;;  %v1224_v4 = vmul.f32 %v1740_v24, %v2461_v49  ;;  %1761 = vrcp.f32 %v1068_v54 }
 0x171   : > { %v1744_v14 = vpop.eup %1743  ;;  %1763 = vrcp.f32 %v1100_v22  ;;  %v1071_v27 = vadd.f32 1.0, %v1742_v3 }
 0x172   : > { %v1746_v8 = vpop.eup %1745  ;;  %1289 = vst.msk [vmem:[%s2083_s6 + $0x1c0] sm:$0xff] %vm1232_vm3, %v1224_v4  ;;  %v1103_v39 = vadd.f32 1.0, %v1744_v14 }
 0x173   : > { %v1748_v44 = vpop.eup %1747  ;;  %1765 = vrcp.f32 %v1071_v27  ;;  %v1069_v21 = vadd.f32 1.0, %v1746_v8 }
 0x174   : > { %v1750_v46 = vpop.eup %1749  ;;  %1767 = vrcp.f32 %v1103_v39  ;;  %v1101_v51 = vadd.f32 1.0, %v1748_v44 }
 0x175   : > { %v1752_v55 = vpop.eup %1751  ;;  %v1195_v49 = vmul.f32 %v1750_v46, %v2467_v23  ;;  %1769 = vrcp.f32 %v1069_v21 }
 0x176   : > { %v1754_v13 = vpop.eup %1753  ;;  %v1227_v20 = vmul.f32 %v1752_v55, %v2471_v32  ;;  %1771 = vrcp.f32 %v1101_v51 }
 0x177   : > { %v1756_v41 = vpop.eup %1755  ;;  %1260 = vst.msk [vmem:[%s2083_s6 + $0xd8] sm:$0xff] %vm1232_vm3, %v1195_v49  ;;  %v1193_v25 = vmul.f32 %v1754_v13, %v2483_v63 }
 0x178   : > { %v1758_v43 = vpop.eup %1757  ;;  %1292 = vst.msk [vmem:[%s2083_s6 + $0x1d8] sm:$0xff] %vm1232_vm3, %v1227_v20  ;;  %v1225_v62 = vmul.f32 %v1756_v41, %v2499_v42 }
 0x179   : > { %v1760_v23 = vpop.eup %1759  ;;  %1258 = vst.msk [vmem:[%s2083_s6 + $0xc8] sm:$0xff] %vm1232_vm3, %v1193_v25  ;;  %v1198_v56 = vmul.f32 %v1758_v43, %v2502_v47 }
 0x17a   : > { %v1762_v32 = vpop.eup %1761  ;;  %1290 = vst.msk [vmem:[%s2083_s6 + $0x1c8] sm:$0xff] %vm1232_vm3, %v1225_v62  ;;  %v1230_v29 = vmul.f32 %v1760_v23, %v2505_v50 }
 0x17b   : > { %v1764_v63 = vpop.eup %1763  ;;  %1263 = vst.msk [vmem:[%s2083_s6 + $0xf0] sm:$0xff] %vm1232_vm3, %v1198_v56  ;;  %v1196_v18 = vmul.f32 %v1762_v32, %v2511_v57 }
 0x17c   : > { %1295 = vst.msk [vmem:[%s2083_s6 + $0x1f0] sm:$0xff] %vm1232_vm3, %v1230_v29  ;;  %v1228_v42 = vmul.f32 %v1764_v63, %v2523_v9 }
 0x17d   : > { %v1766_v59 = vpop.eup %1765  ;;  %1261 = vst.msk [vmem:[%s2083_s6 + $0xe0] sm:$0xff] %vm1232_vm3, %v1196_v18 }
 0x17e   : > { %v1768_v47 = vpop.eup %1767  ;;  %1293 = vst.msk [vmem:[%s2083_s6 + $0x1e0] sm:$0xff] %vm1232_vm3, %v1228_v42  ;;  %v1199_v50 = vmul.f32 %v1766_v59, %v2530_v30 }
 0x17f   : > { %v1770_v10 = vpop.eup %1769  ;;  %v1231_v12 = vmul.f32 %v1768_v47, %v2534_v26 }
 0x180   : > { %v1772_v38 = vpop.eup %1771  ;;  %1264 = vst.msk [vmem:[%s2083_s6 + $0xf8] sm:$0xff] %vm1232_vm3, %v1199_v50  ;;  %v1197_v57 = vmul.f32 %v1770_v10, %v2543_v19 }
 0x181   : > { %1296 = vst.msk [vmem:[%s2083_s6 + $0x1f8] sm:$0xff] %vm1232_vm3, %v1231_v12  ;;  %v1229_v9 = vmul.f32 %v1772_v38, %v2560_v28 }
 0x182   : > { %1262 = vst.msk [vmem:[%s2083_s6 + $0xe8] sm:$0xff] %vm1232_vm3, %v1197_v57 }
 0x183   : > { %1294 = vst.msk [vmem:[%s2083_s6 + $0x1e8] sm:$0xff] %vm1232_vm3, %v1229_v9 }
 0x184 PF: > { %s14_s15 = sadd.s32 1, %s1781_s15  }
 0x185   : > { %p11_p4 = scmp.ge.s32.totalorder %s14_s15, 6  }
 0x187   :  { %13 = sbr.rel (!%p11_p4) target bundleno = 1 (0x1), region = 66 }

</bundles_post_ra>
